<compile_context>
chip_gen: v7x
topology: tpu7x:2x2x1
jax: 0.10.0
libtpu: 0.0.40
codegen_flags: <defaults>
</compile_context>

<pallas_src>
import jax
import jax.numpy as jnp
from jax import lax
from jax.experimental import pallas as pl
from jax.experimental.pallas import tpu as pltpu


def _round_up(x, m):
    return ((x + m - 1) // m) * m


def qmix_rnn_kernel(tlen_ref, x_ref, h0_ref, w1_ref, wi_ref, wh_ref, bias_ref,
                    w2_ref, b2_ref, q_ref, hout_ref, h_scr):
    """One grid step = TB GRU time steps (fully unrolled).  h is carried in the
    persistent VMEM scratch `h_scr`; weights are VMEM-resident across the grid."""
    tb = pl.program_id(0)
    TB = x_ref.shape[0]              # time steps per grid step (static)
    hp = h_scr.shape[-1]             # lane-padded hidden width (multiple of 128)

    @pl.when(tb == 0)
    def _():
        h_scr[...] = h0_ref[...]     # initialize the resident carry from h0

    t_len = tlen_ref[0]              # true sequence length (SMEM scalar)
    base = tb * TB

    # Small bias rows: hoist the loads out of the unrolled time loop.
    b1 = bias_ref[0:1, :]
    b_r = bias_ref[1:2, :]           # b_ir + b_hr (folded)
    b_z = bias_ref[2:3, :]           # b_iz + b_hz (folded)
    b_in = bias_ref[3:4, :]
    b_hn = bias_ref[4:5, :]          # kept separate: scaled by r

    def step(i, h):
        x = x_ref[i]

        # fc1 + ReLU (output padded to HP lanes; pad weight cols / bias lanes are zero)
        xh = jnp.maximum(
            jnp.dot(x, w1_ref[...], preferred_element_type=jnp.float32) + b1, 0.0)

        # Fused GRU gate matmuls: one [B, 3*HP] matmul for input gates, one for hidden.
        gi = jnp.dot(xh, wi_ref[...], preferred_element_type=jnp.float32)
        gh = jnp.dot(h, wh_ref[...], preferred_element_type=jnp.float32)

        # PyTorch GRUCell semantics.
        r = jax.nn.sigmoid(gi[:, 0:hp] + gh[:, 0:hp] + b_r)
        z = jax.nn.sigmoid(gi[:, hp:2 * hp] + gh[:, hp:2 * hp] + b_z)
        n = jnp.tanh(gi[:, 2 * hp:3 * hp] + b_in + r * (gh[:, 2 * hp:3 * hp] + b_hn))
        h_new = (1.0 - z) * n + z * h                  # pad lanes stay exactly 0

        # fc2 into a lane-dense (128-padded) q row-block for this time step.
        q_ref[i] = jnp.dot(h_new, w2_ref[...],
                           preferred_element_type=jnp.float32) + b2_ref[...]

        # Guard: padded tail steps (base+i >= T) must not update the carry.
        return jnp.where(base + i < t_len, h_new, h)

    h_final = lax.fori_loop(0, TB, step, h_scr[...], unroll=True)
    h_scr[...] = h_final

    @pl.when(tb == pl.num_programs(0) - 1)
    def _():
        hout_ref[...] = h_final


def pack_params(p):
    """Pad / fuse the logical (PyTorch-layout) params into the MXU-friendly layout."""
    in_dim, hidden = p["w1"].shape
    n_actions = p["w2"].shape[1]
    HP = _round_up(hidden, 128)
    AP = _round_up(n_actions, 128)

    def pad2(w, rows, cols):
        return jnp.pad(w, ((0, rows - w.shape[0]), (0, cols - w.shape[1])))

    w1 = pad2(p["w1"], in_dim, HP)                                   # [in, HP]
    wi = jnp.concatenate(                                            # [HP, 3*HP]
        [pad2(p["w_ir"], HP, HP), pad2(p["w_iz"], HP, HP), pad2(p["w_in"], HP, HP)],
        axis=1)
    wh = jnp.concatenate(                                            # [HP, 3*HP]
        [pad2(p["w_hr"], HP, HP), pad2(p["w_hz"], HP, HP), pad2(p["w_hn"], HP, HP)],
        axis=1)

    bias = jnp.zeros((8, HP), jnp.float32)
    bias = bias.at[0, :hidden].set(p["b1"][0])
    bias = bias.at[1, :hidden].set(p["b_ir"][0] + p["b_hr"][0])      # folded r bias
    bias = bias.at[2, :hidden].set(p["b_iz"][0] + p["b_hz"][0])      # folded z bias
    bias = bias.at[3, :hidden].set(p["b_in"][0])
    bias = bias.at[4, :hidden].set(p["b_hn"][0])                     # separate (scaled by r)

    w2 = pad2(p["w2"], HP, AP)                                       # [HP, AP]
    b2 = pad2(p["b2"], 1, AP)                                        # [1, AP]

    return dict(w1=w1, wi=wi, wh=wh, bias=bias, w2=w2, b2=b2,
                hidden=hidden, n_actions=n_actions, in_dim=in_dim, HP=HP, AP=AP)


def qmix_rnn_rollout(inputs_seq, hidden_state, packed, time_block=8):
    """inputs_seq: [T, B, input_shape]; hidden_state: [B, hidden] (or reshapable).
    Returns q for every step ([T, B, n_actions]) and the final hidden state."""
    T, B, in_dim = inputs_seq.shape
    hidden, n_actions = packed["hidden"], packed["n_actions"]
    HP, AP = packed["HP"], packed["AP"]

    TB = max(1, min(int(time_block), T))          # time steps per grid step
    n_blocks = (T + TB - 1) // TB
    Tp = n_blocks * TB
    BP = _round_up(B, 8)                          # sublane-aligned batch

    x = inputs_seq.astype(jnp.float32)
    if Tp != T or BP != B:
        x = jnp.pad(x, ((0, Tp - T), (0, BP - B), (0, 0)))

    h0 = hidden_state.reshape(-1, hidden).astype(jnp.float32)
    h0 = jnp.pad(h0, ((0, BP - B), (0, HP - hidden)))

    t_len = jnp.array([T], jnp.int32)             # scalar-prefetch: true seq length

    q_all, h_out = pl.pallas_call(
        qmix_rnn_kernel,
        grid_spec=pltpu.PrefetchScalarGridSpec(
            num_scalar_prefetch=1,
            grid=(n_blocks,),
            in_specs=[
                pl.BlockSpec((TB, BP, in_dim), lambda t, tl: (t, 0, 0)),  # x chunk
                pl.BlockSpec((BP, HP), lambda t, tl: (0, 0)),             # h0
                pl.BlockSpec((in_dim, HP), lambda t, tl: (0, 0)),         # w1 (resident)
                pl.BlockSpec((HP, 3 * HP), lambda t, tl: (0, 0)),         # W_i [r|z|n]
                pl.BlockSpec((HP, 3 * HP), lambda t, tl: (0, 0)),         # W_h [r|z|n]
                pl.BlockSpec((8, HP), lambda t, tl: (0, 0)),              # packed biases
                pl.BlockSpec((HP, AP), lambda t, tl: (0, 0)),             # w2
                pl.BlockSpec((1, AP), lambda t, tl: (0, 0)),              # b2
            ],
            out_specs=(
                pl.BlockSpec((TB, BP, AP), lambda t, tl: (t, 0, 0)),      # q chunk
                pl.BlockSpec((BP, HP), lambda t, tl: (0, 0)),             # final h
            ),
            scratch_shapes=[pltpu.VMEM((BP, HP), jnp.float32)],           # h carry
        ),
        out_shape=(
            jax.ShapeDtypeStruct((Tp, BP, AP), jnp.float32),
            jax.ShapeDtypeStruct((BP, HP), jnp.float32),
        ),
        compiler_params=pltpu.CompilerParams(
            dimension_semantics=("arbitrary",)),                          # sequential time
    )(t_len, x, h0,
      packed["w1"], packed["wi"], packed["wh"],
      packed["bias"], packed["w2"], packed["b2"])

    return q_all[:T, :B, :n_actions], h_out[:B, :hidden]


def qmix_rnn_agent_forward(inputs, hidden_state, packed):
    """Single-step API matching the PyTorch module: (q, h) = forward(inputs, hidden)."""
    q_all, h = qmix_rnn_rollout(inputs[None], hidden_state, packed, time_block=1)
    return q_all[0], h


def init_params(key, input_shape, hidden, n_actions):
    """Deterministic synthetic params; shapes match nn.Linear / nn.GRUCell
    (weights stored pre-transposed as [in_features, out_features])."""
    ks = jax.random.split(key, 16)
    u = lambda k, shape, bound: jax.random.uniform(
        k, shape, jnp.float32, minval=-bound, maxval=bound)
    b1s = 1.0 / (input_shape ** 0.5)
    bh = 1.0 / (hidden ** 0.5)
    return {
        "w1": u(ks[0], (input_shape, hidden), b1s),
        "b1": u(ks[1], (1, hidden), b1s),
        "w_ir": u(ks[2], (hidden, hidden), bh),
        "w_iz": u(ks[3], (hidden, hidden), bh),
        "w_in": u(ks[4], (hidden, hidden), bh),
        "w_hr": u(ks[5], (hidden, hidden), bh),
        "w_hz": u(ks[6], (hidden, hidden), bh),
        "w_hn": u(ks[7], (hidden, hidden), bh),
        "b_ir": u(ks[8], (1, hidden), bh),
        "b_iz": u(ks[9], (1, hidden), bh),
        "b_in": u(ks[10], (1, hidden), bh),
        "b_hr": u(ks[11], (1, hidden), bh),
        "b_hz": u(ks[12], (1, hidden), bh),
        "b_hn": u(ks[13], (1, hidden), bh),
        "w2": u(ks[14], (hidden, n_actions), bh),
        "b2": u(ks[15], (1, n_actions), bh),
    }


def reference_step(x, h, p):
    """Pure-JAX reference of one PyTorch QMIXRNNAgent.forward step."""
    xh = jnp.maximum(x @ p["w1"] + p["b1"], 0.0)
    h = h.reshape(-1, p["w1"].shape[1])
    r = jax.nn.sigmoid(xh @ p["w_ir"] + p["b_ir"] + h @ p["w_hr"] + p["b_hr"])
    z = jax.nn.sigmoid(xh @ p["w_iz"] + p["b_iz"] + h @ p["w_hz"] + p["b_hz"])
    n = jnp.tanh(xh @ p["w_in"] + p["b_in"] + r * (h @ p["w_hn"] + p["b_hn"]))
    h_new = (1.0 - z) * n + z * h
    q = h_new @ p["w2"] + p["b2"]
    return q, h_new


if __name__ == "__main__":
    # Small shapes: T=6 timesteps, batch (= bs * n_agents) = 8, input=48, hidden=64, actions=16
    T, B, INPUT_SHAPE, HIDDEN, N_ACTIONS = 6, 8, 48, 64, 16

    key = jax.random.PRNGKey(0)
    k_x, k_h, k_p = jax.random.split(key, 3)

    x_seq = jax.random.normal(k_x, (T, B, INPUT_SHAPE), jnp.float32)
    h0 = jax.random.normal(k_h, (B, HIDDEN), jnp.float32)
    params = init_params(k_p, INPUT_SHAPE, HIDDEN, N_ACTIONS)
    packed = pack_params(params)

    # Reference: unroll the module step by step in pure JAX.
    h_ref = h0
    q_refs = []
    for t in range(T):
        q_t, h_ref = reference_step(x_seq[t], h_ref, params)
        q_refs.append(q_t)
    q_ref = jnp.stack(q_refs)

    # Multi-step rollout, time chunking with a partial tail block (T=6, TB=4 -> grid=2).
    q_all, h_T = qmix_rnn_rollout(x_seq, h0, packed, time_block=4)
    jax.block_until_ready((q_all, h_T))
    assert q_all.shape == (T, B, N_ACTIONS) and h_T.shape == (B, HIDDEN)
    assert jnp.allclose(q_all, q_ref, atol=1e-4, rtol=1e-4), \
        float(jnp.max(jnp.abs(q_all - q_ref)))
    assert jnp.allclose(h_T, h_ref, atol=1e-4, rtol=1e-4), \
        float(jnp.max(jnp.abs(h_T - h_ref)))

    # Same rollout with the default time block (single grid step, no tail padding).
    q_all2, h_T2 = qmix_rnn_rollout(x_seq, h0, packed)
    jax.block_until_ready((q_all2, h_T2))
    assert jnp.allclose(q_all2, q_ref, atol=1e-4, rtol=1e-4)
    assert jnp.allclose(h_T2, h_ref, atol=1e-4, rtol=1e-4)

    # Single-step API (matches the PyTorch module's forward signature).
    q1, h1 = qmix_rnn_agent_forward(x_seq[0], h0, packed)
    jax.block_until_ready((q1, h1))
    q1_ref, h1_ref = reference_step(x_seq[0], h0, params)
    assert jnp.allclose(q1, q1_ref, atol=1e-4, rtol=1e-4)
    assert jnp.allclose(h1, h1_ref, atol=1e-4, rtol=1e-4)

    print("KERNEL_OK")
</pallas_src>

<mosaic_0001>
module attributes {stable_mosaic.version = 11 : i64} {
  func.func @qmix_rnn_kernel(%arg0: i32, %arg1: memref<1xi32, #tpu.memory_space<smem>>, %arg2: memref<4x8x48xf32, #tpu.memory_space<vmem>>, %arg3: memref<8x128xf32, #tpu.memory_space<vmem>>, %arg4: memref<48x128xf32, #tpu.memory_space<vmem>>, %arg5: memref<128x384xf32, #tpu.memory_space<vmem>>, %arg6: memref<128x384xf32, #tpu.memory_space<vmem>>, %arg7: memref<8x128xf32, #tpu.memory_space<vmem>>, %arg8: memref<128x128xf32, #tpu.memory_space<vmem>>, %arg9: memref<1x128xf32, #tpu.memory_space<vmem>>, %arg10: memref<4x8x128xf32, #tpu.memory_space<vmem>>, %arg11: memref<8x128xf32, #tpu.memory_space<vmem>>, %arg12: memref<8x128xf32, #tpu.memory_space<vmem>>) attributes {dimension_semantics = [#tpu.dimension_semantics<arbitrary>], iteration_bounds = array<i64: 2>, scalar_prefetch = 1 : i64, scratch_operands = 1 : i64, tpu.core_type = #tpu.core_type<tc>, window_params = [{transform_indices = @transform_0, window_bounds = array<i64: 4, 8, 48>}, {pipeline_mode = #tpu.pipeline_mode<synchronous>, transform_indices = @transform_1, window_bounds = array<i64: 8, 128>}, {pipeline_mode = #tpu.pipeline_mode<synchronous>, transform_indices = @transform_2, window_bounds = array<i64: 48, 128>}, {pipeline_mode = #tpu.pipeline_mode<synchronous>, transform_indices = @transform_3, window_bounds = array<i64: 128, 384>}, {pipeline_mode = #tpu.pipeline_mode<synchronous>, transform_indices = @transform_4, window_bounds = array<i64: 128, 384>}, {pipeline_mode = #tpu.pipeline_mode<synchronous>, transform_indices = @transform_5, window_bounds = array<i64: 8, 128>}, {pipeline_mode = #tpu.pipeline_mode<synchronous>, transform_indices = @transform_6, window_bounds = array<i64: 128, 128>}, {pipeline_mode = #tpu.pipeline_mode<synchronous>, transform_indices = @transform_7, window_bounds = array<i64: 1, 128>}, {transform_indices = @transform_8, window_bounds = array<i64: 4, 8, 128>}, {pipeline_mode = #tpu.pipeline_mode<synchronous>, transform_indices = @transform_9, window_bounds = array<i64: 8, 128>}]} {
    %c0_i32 = arith.constant 0 : i32
    %0 = arith.cmpi eq, %arg0, %c0_i32 : i32
    %1 = arith.extui %0 : i1 to i32
    %c0_i32_0 = arith.constant 0 : i32
    %2 = arith.cmpi ne, %1, %c0_i32_0 : i32
    scf.if %2 {
      %c0_102 = arith.constant 0 : index
      %c0_103 = arith.constant 0 : index
      %251 = vector.load %arg3[%c0_102, %c0_103] : memref<8x128xf32, #tpu.memory_space<vmem>>, vector<8x128xf32>
      %c0_104 = arith.constant 0 : index
      %c0_105 = arith.constant 0 : index
      %252 = vector.load %arg12[%c0_104, %c0_105] : memref<8x128xf32, #tpu.memory_space<vmem>>, vector<8x128xf32>
      tpu.vector_store %arg12[%c0_104, %c0_105], %251 {strides = array<i32>} : memref<8x128xf32, #tpu.memory_space<vmem>>, vector<8x128xf32>,
    } else {
    }
    %c0 = arith.constant 0 : index
    %3 = memref.load %arg1[%c0] : memref<1xi32, #tpu.memory_space<smem>>
    %c4_i32 = arith.constant 4 : i32
    %4 = arith.muli %arg0, %c4_i32 : i32
    %c0_1 = arith.constant 0 : index
    %c0_2 = arith.constant 0 : index
    %5 = vector.load %arg7[%c0_1, %c0_2] : memref<8x128xf32, #tpu.memory_space<vmem>>, vector<1x128xf32>
    %c1 = arith.constant 1 : index
    %c0_3 = arith.constant 0 : index
    %6 = vector.load %arg7[%c1, %c0_3] : memref<8x128xf32, #tpu.memory_space<vmem>>, vector<1x128xf32>
    %c2 = arith.constant 2 : index
    %c0_4 = arith.constant 0 : index
    %7 = vector.load %arg7[%c2, %c0_4] : memref<8x128xf32, #tpu.memory_space<vmem>>, vector<1x128xf32>
    %c3 = arith.constant 3 : index
    %c0_5 = arith.constant 0 : index
    %8 = vector.load %arg7[%c3, %c0_5] : memref<8x128xf32, #tpu.memory_space<vmem>>, vector<1x128xf32>
    %c4 = arith.constant 4 : index
    %c0_6 = arith.constant 0 : index
    %9 = vector.load %arg7[%c4, %c0_6] : memref<8x128xf32, #tpu.memory_space<vmem>>, vector<1x128xf32>
    %c0_7 = arith.constant 0 : index
    %c0_8 = arith.constant 0 : index
    %10 = vector.load %arg12[%c0_7, %c0_8] : memref<8x128xf32, #tpu.memory_space<vmem>>, vector<8x128xf32>
    %c0_i32_9 = arith.constant 0 : i32
    %11 = arith.index_cast %c0_i32_9 : i32 to index
    %c0_10 = arith.constant 0 : index
    %c0_11 = arith.constant 0 : index
    %12 = vector.load %arg2[%11, %c0_10, %c0_11] : memref<4x8x48xf32, #tpu.memory_space<vmem>>, vector<1x8x48xf32>
    %13 = vector.shape_cast %12 : vector<1x8x48xf32> to vector<8x48xf32>
    %c0_12 = arith.constant 0 : index
    %c0_13 = arith.constant 0 : index
    %14 = vector.load %arg4[%c0_12, %c0_13] : memref<48x128xf32, #tpu.memory_space<vmem>>, vector<48x128xf32>
    %cst = arith.constant dense<0.000000e+00> : vector<8x128xf32>
    %15 = tpu.matmul %13, %14, %cst {dimension_numbers = #tpu.dot_dimension_numbers<[1], [0], [0], [1], [0, 0, 1, 1], [], []>} : vector<8x48xf32>, vector<48x128xf32>, vector<8x128xf32> -> vector<8x128xf32>
    %16 = vector.broadcast %5 : vector<1x128xf32> to vector<8x128xf32>
    %17 = arith.addf %15, %16 : vector<8x128xf32>
    %cst_14 = arith.constant 0.000000e+00 : f32
    %18 = vector.broadcast %cst_14 : f32 to vector<8x128xf32>
    %19 = arith.maximumf %17, %18 : vector<8x128xf32>
    %c0_15 = arith.constant 0 : index
    %c0_16 = arith.constant 0 : index
    %20 = vector.load %arg5[%c0_15, %c0_16] : memref<128x384xf32, #tpu.memory_space<vmem>>, vector<128x384xf32>
    %cst_17 = arith.constant dense<0.000000e+00> : vector<8x384xf32>
    %21 = tpu.matmul %19, %20, %cst_17 {dimension_numbers = #tpu.dot_dimension_numbers<[1], [0], [0], [1], [0, 0, 1, 1], [], []>} : vector<8x128xf32>, vector<128x384xf32>, vector<8x384xf32> -> vector<8x384xf32>
    %c0_18 = arith.constant 0 : index
    %c0_19 = arith.constant 0 : index
    %22 = vector.load %arg6[%c0_18, %c0_19] : memref<128x384xf32, #tpu.memory_space<vmem>>, vector<128x384xf32>
    %cst_20 = arith.constant dense<0.000000e+00> : vector<8x384xf32>
    %23 = tpu.matmul %10, %22, %cst_20 {dimension_numbers = #tpu.dot_dimension_numbers<[1], [0], [0], [1], [0, 0, 1, 1], [], []>} : vector<8x128xf32>, vector<128x384xf32>, vector<8x384xf32> -> vector<8x384xf32>
    %24 = vector.extract_strided_slice %21 {offsets = [0, 0], sizes = [8, 128], strides = [1, 1]} : vector<8x384xf32> to vector<8x128xf32>
    %25 = vector.extract_strided_slice %23 {offsets = [0, 0], sizes = [8, 128], strides = [1, 1]} : vector<8x384xf32> to vector<8x128xf32>
    %26 = arith.addf %24, %25 : vector<8x128xf32>
    %27 = vector.broadcast %6 : vector<1x128xf32> to vector<8x128xf32>
    %28 = arith.addf %26, %27 : vector<8x128xf32>
    %29 = arith.negf %28 : vector<8x128xf32>
    %30 = math.exp %29 : vector<8x128xf32>
    %cst_21 = arith.constant 1.000000e+00 : f32
    %31 = vector.broadcast %cst_21 : f32 to vector<8x128xf32>
    %32 = arith.addf %31, %30 : vector<8x128xf32>
    %33 = arith.divf %31, %32 : vector<8x128xf32>
    %34 = vector.extract_strided_slice %21 {offsets = [0, 128], sizes = [8, 128], strides = [1, 1]} : vector<8x384xf32> to vector<8x128xf32>
    %35 = vector.extract_strided_slice %23 {offsets = [0, 128], sizes = [8, 128], strides = [1, 1]} : vector<8x384xf32> to vector<8x128xf32>
    %36 = arith.addf %34, %35 : vector<8x128xf32>
    %37 = vector.broadcast %7 : vector<1x128xf32> to vector<8x128xf32>
    %38 = arith.addf %36, %37 : vector<8x128xf32>
    %39 = arith.negf %38 : vector<8x128xf32>
    %40 = math.exp %39 : vector<8x128xf32>
    %cst_22 = arith.constant 1.000000e+00 : f32
    %41 = vector.broadcast %cst_22 : f32 to vector<8x128xf32>
    %42 = arith.addf %41, %40 : vector<8x128xf32>
    %43 = arith.divf %41, %42 : vector<8x128xf32>
    %44 = vector.extract_strided_slice %21 {offsets = [0, 256], sizes = [8, 128], strides = [1, 1]} : vector<8x384xf32> to vector<8x128xf32>
    %45 = vector.broadcast %8 : vector<1x128xf32> to vector<8x128xf32>
    %46 = arith.addf %44, %45 : vector<8x128xf32>
    %47 = vector.extract_strided_slice %23 {offsets = [0, 256], sizes = [8, 128], strides = [1, 1]} : vector<8x384xf32> to vector<8x128xf32>
    %48 = vector.broadcast %9 : vector<1x128xf32> to vector<8x128xf32>
    %49 = arith.addf %47, %48 : vector<8x128xf32>
    %50 = arith.mulf %33, %49 : vector<8x128xf32>
    %51 = arith.addf %46, %50 : vector<8x128xf32>
    %52 = math.tanh %51 : vector<8x128xf32>
    %cst_23 = arith.constant 1.000000e+00 : f32
    %53 = vector.broadcast %cst_23 : f32 to vector<8x128xf32>
    %54 = arith.subf %53, %43 : vector<8x128xf32>
    %55 = arith.mulf %54, %52 : vector<8x128xf32>
    %56 = arith.mulf %43, %10 : vector<8x128xf32>
    %57 = arith.addf %55, %56 : vector<8x128xf32>
    %c0_24 = arith.constant 0 : index
    %c0_25 = arith.constant 0 : index
    %58 = vector.load %arg8[%c0_24, %c0_25] : memref<128x128xf32, #tpu.memory_space<vmem>>, vector<128x128xf32>
    %cst_26 = arith.constant dense<0.000000e+00> : vector<8x128xf32>
    %59 = tpu.matmul %57, %58, %cst_26 {dimension_numbers = #tpu.dot_dimension_numbers<[1], [0], [0], [1], [0, 0, 1, 1], [], []>} : vector<8x128xf32>, vector<128x128xf32>, vector<8x128xf32> -> vector<8x128xf32>
    %c0_27 = arith.constant 0 : index
    %c0_28 = arith.constant 0 : index
    %60 = vector.load %arg9[%c0_27, %c0_28] : memref<1x128xf32, #tpu.memory_space<vmem>>, vector<1x128xf32>
    %61 = vector.broadcast %60 : vector<1x128xf32> to vector<8x128xf32>
    %62 = arith.addf %59, %61 : vector<8x128xf32>
    %63 = arith.index_cast %c0_i32_9 : i32 to index
    %c0_29 = arith.constant 0 : index
    %c0_30 = arith.constant 0 : index
    %64 = vector.load %arg10[%63, %c0_29, %c0_30] : memref<4x8x128xf32, #tpu.memory_space<vmem>>, vector<1x8x128xf32>
    %65 = vector.shape_cast %64 : vector<1x8x128xf32> to vector<8x128xf32>
    %66 = vector.shape_cast %62 : vector<8x128xf32> to vector<1x8x128xf32>
    tpu.vector_store %arg10[%63, %c0_29, %c0_30], %66 {strides = array<i32>} : memref<4x8x128xf32, #tpu.memory_space<vmem>>, vector<1x8x128xf32>,
    %67 = arith.addi %4, %c0_i32_9 : i32
    %68 = arith.cmpi slt, %67, %3 : i32
    %69 = arith.select %68, %57, %10 : vector<8x128xf32>
    %c1_i32 = arith.constant 1 : i32
    %70 = arith.index_cast %c1_i32 : i32 to index
    %c0_31 = arith.constant 0 : index
    %c0_32 = arith.constant 0 : index
    %71 = vector.load %arg2[%70, %c0_31, %c0_32] : memref<4x8x48xf32, #tpu.memory_space<vmem>>, vector<1x8x48xf32>
    %72 = vector.shape_cast %71 : vector<1x8x48xf32> to vector<8x48xf32>
    %c0_33 = arith.constant 0 : index
    %c0_34 = arith.constant 0 : index
    %73 = vector.load %arg4[%c0_33, %c0_34] : memref<48x128xf32, #tpu.memory_space<vmem>>, vector<48x128xf32>
    %cst_35 = arith.constant dense<0.000000e+00> : vector<8x128xf32>
    %74 = tpu.matmul %72, %73, %cst_35 {dimension_numbers = #tpu.dot_dimension_numbers<[1], [0], [0], [1], [0, 0, 1, 1], [], []>} : vector<8x48xf32>, vector<48x128xf32>, vector<8x128xf32> -> vector<8x128xf32>
    %75 = vector.broadcast %5 : vector<1x128xf32> to vector<8x128xf32>
    %76 = arith.addf %74, %75 : vector<8x128xf32>
    %cst_36 = arith.constant 0.000000e+00 : f32
    %77 = vector.broadcast %cst_36 : f32 to vector<8x128xf32>
    %78 = arith.maximumf %76, %77 : vector<8x128xf32>
    %c0_37 = arith.constant 0 : index
    %c0_38 = arith.constant 0 : index
    %79 = vector.load %arg5[%c0_37, %c0_38] : memref<128x384xf32, #tpu.memory_space<vmem>>, vector<128x384xf32>
    %cst_39 = arith.constant dense<0.000000e+00> : vector<8x384xf32>
    %80 = tpu.matmul %78, %79, %cst_39 {dimension_numbers = #tpu.dot_dimension_numbers<[1], [0], [0], [1], [0, 0, 1, 1], [], []>} : vector<8x128xf32>, vector<128x384xf32>, vector<8x384xf32> -> vector<8x384xf32>
    %c0_40 = arith.constant 0 : index
    %c0_41 = arith.constant 0 : index
    %81 = vector.load %arg6[%c0_40, %c0_41] : memref<128x384xf32, #tpu.memory_space<vmem>>, vector<128x384xf32>
    %cst_42 = arith.constant dense<0.000000e+00> : vector<8x384xf32>
    %82 = tpu.matmul %69, %81, %cst_42 {dimension_numbers = #tpu.dot_dimension_numbers<[1], [0], [0], [1], [0, 0, 1, 1], [], []>} : vector<8x128xf32>, vector<128x384xf32>, vector<8x384xf32> -> vector<8x384xf32>
    %83 = vector.extract_strided_slice %80 {offsets = [0, 0], sizes = [8, 128], strides = [1, 1]} : vector<8x384xf32> to vector<8x128xf32>
    %84 = vector.extract_strided_slice %82 {offsets = [0, 0], sizes = [8, 128], strides = [1, 1]} : vector<8x384xf32> to vector<8x128xf32>
    %85 = arith.addf %83, %84 : vector<8x128xf32>
    %86 = vector.broadcast %6 : vector<1x128xf32> to vector<8x128xf32>
    %87 = arith.addf %85, %86 : vector<8x128xf32>
    %88 = arith.negf %87 : vector<8x128xf32>
    %89 = math.exp %88 : vector<8x128xf32>
    %cst_43 = arith.constant 1.000000e+00 : f32
    %90 = vector.broadcast %cst_43 : f32 to vector<8x128xf32>
    %91 = arith.addf %90, %89 : vector<8x128xf32>
    %92 = arith.divf %90, %91 : vector<8x128xf32>
    %93 = vector.extract_strided_slice %80 {offsets = [0, 128], sizes = [8, 128], strides = [1, 1]} : vector<8x384xf32> to vector<8x128xf32>
    %94 = vector.extract_strided_slice %82 {offsets = [0, 128], sizes = [8, 128], strides = [1, 1]} : vector<8x384xf32> to vector<8x128xf32>
    %95 = arith.addf %93, %94 : vector<8x128xf32>
    %96 = vector.broadcast %7 : vector<1x128xf32> to vector<8x128xf32>
    %97 = arith.addf %95, %96 : vector<8x128xf32>
    %98 = arith.negf %97 : vector<8x128xf32>
    %99 = math.exp %98 : vector<8x128xf32>
    %cst_44 = arith.constant 1.000000e+00 : f32
    %100 = vector.broadcast %cst_44 : f32 to vector<8x128xf32>
    %101 = arith.addf %100, %99 : vector<8x128xf32>
    %102 = arith.divf %100, %101 : vector<8x128xf32>
    %103 = vector.extract_strided_slice %80 {offsets = [0, 256], sizes = [8, 128], strides = [1, 1]} : vector<8x384xf32> to vector<8x128xf32>
    %104 = vector.broadcast %8 : vector<1x128xf32> to vector<8x128xf32>
    %105 = arith.addf %103, %104 : vector<8x128xf32>
    %106 = vector.extract_strided_slice %82 {offsets = [0, 256], sizes = [8, 128], strides = [1, 1]} : vector<8x384xf32> to vector<8x128xf32>
    %107 = vector.broadcast %9 : vector<1x128xf32> to vector<8x128xf32>
    %108 = arith.addf %106, %107 : vector<8x128xf32>
    %109 = arith.mulf %92, %108 : vector<8x128xf32>
    %110 = arith.addf %105, %109 : vector<8x128xf32>
    %111 = math.tanh %110 : vector<8x128xf32>
    %cst_45 = arith.constant 1.000000e+00 : f32
    %112 = vector.broadcast %cst_45 : f32 to vector<8x128xf32>
    %113 = arith.subf %112, %102 : vector<8x128xf32>
    %114 = arith.mulf %113, %111 : vector<8x128xf32>
    %115 = arith.mulf %102, %69 : vector<8x128xf32>
    %116 = arith.addf %114, %115 : vector<8x128xf32>
    %c0_46 = arith.constant 0 : index
    %c0_47 = arith.constant 0 : index
    %117 = vector.load %arg8[%c0_46, %c0_47] : memref<128x128xf32, #tpu.memory_space<vmem>>, vector<128x128xf32>
    %cst_48 = arith.constant dense<0.000000e+00> : vector<8x128xf32>
    %118 = tpu.matmul %116, %117, %cst_48 {dimension_numbers = #tpu.dot_dimension_numbers<[1], [0], [0], [1], [0, 0, 1, 1], [], []>} : vector<8x128xf32>, vector<128x128xf32>, vector<8x128xf32> -> vector<8x128xf32>
    %c0_49 = arith.constant 0 : index
    %c0_50 = arith.constant 0 : index
    %119 = vector.load %arg9[%c0_49, %c0_50] : memref<1x128xf32, #tpu.memory_space<vmem>>, vector<1x128xf32>
    %120 = vector.broadcast %119 : vector<1x128xf32> to vector<8x128xf32>
    %121 = arith.addf %118, %120 : vector<8x128xf32>
    %122 = arith.index_cast %c1_i32 : i32 to index
    %c0_51 = arith.constant 0 : index
    %c0_52 = arith.constant 0 : index
    %123 = vector.load %arg10[%122, %c0_51, %c0_52] : memref<4x8x128xf32, #tpu.memory_space<vmem>>, vector<1x8x128xf32>
    %124 = vector.shape_cast %123 : vector<1x8x128xf32> to vector<8x128xf32>
    %125 = vector.shape_cast %121 : vector<8x128xf32> to vector<1x8x128xf32>
    tpu.vector_store %arg10[%122, %c0_51, %c0_52], %125 {strides = array<i32>} : memref<4x8x128xf32, #tpu.memory_space<vmem>>, vector<1x8x128xf32>,
    %126 = arith.addi %4, %c1_i32 : i32
    %127 = arith.cmpi slt, %126, %3 : i32
    %128 = arith.select %127, %116, %69 : vector<8x128xf32>
    %c2_i32 = arith.constant 2 : i32
    %129 = arith.index_cast %c2_i32 : i32 to index
    %c0_53 = arith.constant 0 : index
    %c0_54 = arith.constant 0 : index
    %130 = vector.load %arg2[%129, %c0_53, %c0_54] : memref<4x8x48xf32, #tpu.memory_space<vmem>>, vector<1x8x48xf32>
    %131 = vector.shape_cast %130 : vector<1x8x48xf32> to vector<8x48xf32>
    %c0_55 = arith.constant 0 : index
    %c0_56 = arith.constant 0 : index
    %132 = vector.load %arg4[%c0_55, %c0_56] : memref<48x128xf32, #tpu.memory_space<vmem>>, vector<48x128xf32>
    %cst_57 = arith.constant dense<0.000000e+00> : vector<8x128xf32>
    %133 = tpu.matmul %131, %132, %cst_57 {dimension_numbers = #tpu.dot_dimension_numbers<[1], [0], [0], [1], [0, 0, 1, 1], [], []>} : vector<8x48xf32>, vector<48x128xf32>, vector<8x128xf32> -> vector<8x128xf32>
    %134 = vector.broadcast %5 : vector<1x128xf32> to vector<8x128xf32>
    %135 = arith.addf %133, %134 : vector<8x128xf32>
    %cst_58 = arith.constant 0.000000e+00 : f32
    %136 = vector.broadcast %cst_58 : f32 to vector<8x128xf32>
    %137 = arith.maximumf %135, %136 : vector<8x128xf32>
    %c0_59 = arith.constant 0 : index
    %c0_60 = arith.constant 0 : index
    %138 = vector.load %arg5[%c0_59, %c0_60] : memref<128x384xf32, #tpu.memory_space<vmem>>, vector<128x384xf32>
    %cst_61 = arith.constant dense<0.000000e+00> : vector<8x384xf32>
    %139 = tpu.matmul %137, %138, %cst_61 {dimension_numbers = #tpu.dot_dimension_numbers<[1], [0], [0], [1], [0, 0, 1, 1], [], []>} : vector<8x128xf32>, vector<128x384xf32>, vector<8x384xf32> -> vector<8x384xf32>
    %c0_62 = arith.constant 0 : index
    %c0_63 = arith.constant 0 : index
    %140 = vector.load %arg6[%c0_62, %c0_63] : memref<128x384xf32, #tpu.memory_space<vmem>>, vector<128x384xf32>
    %cst_64 = arith.constant dense<0.000000e+00> : vector<8x384xf32>
    %141 = tpu.matmul %128, %140, %cst_64 {dimension_numbers = #tpu.dot_dimension_numbers<[1], [0], [0], [1], [0, 0, 1, 1], [], []>} : vector<8x128xf32>, vector<128x384xf32>, vector<8x384xf32> -> vector<8x384xf32>
    %142 = vector.extract_strided_slice %139 {offsets = [0, 0], sizes = [8, 128], strides = [1, 1]} : vector<8x384xf32> to vector<8x128xf32>
    %143 = vector.extract_strided_slice %141 {offsets = [0, 0], sizes = [8, 128], strides = [1, 1]} : vector<8x384xf32> to vector<8x128xf32>
    %144 = arith.addf %142, %143 : vector<8x128xf32>
    %145 = vector.broadcast %6 : vector<1x128xf32> to vector<8x128xf32>
    %146 = arith.addf %144, %145 : vector<8x128xf32>
    %147 = arith.negf %146 : vector<8x128xf32>
    %148 = math.exp %147 : vector<8x128xf32>
    %cst_65 = arith.constant 1.000000e+00 : f32
    %149 = vector.broadcast %cst_65 : f32 to vector<8x128xf32>
    %150 = arith.addf %149, %148 : vector<8x128xf32>
    %151 = arith.divf %149, %150 : vector<8x128xf32>
    %152 = vector.extract_strided_slice %139 {offsets = [0, 128], sizes = [8, 128], strides = [1, 1]} : vector<8x384xf32> to vector<8x128xf32>
    %153 = vector.extract_strided_slice %141 {offsets = [0, 128], sizes = [8, 128], strides = [1, 1]} : vector<8x384xf32> to vector<8x128xf32>
    %154 = arith.addf %152, %153 : vector<8x128xf32>
    %155 = vector.broadcast %7 : vector<1x128xf32> to vector<8x128xf32>
    %156 = arith.addf %154, %155 : vector<8x128xf32>
    %157 = arith.negf %156 : vector<8x128xf32>
    %158 = math.exp %157 : vector<8x128xf32>
    %cst_66 = arith.constant 1.000000e+00 : f32
    %159 = vector.broadcast %cst_66 : f32 to vector<8x128xf32>
    %160 = arith.addf %159, %158 : vector<8x128xf32>
    %161 = arith.divf %159, %160 : vector<8x128xf32>
    %162 = vector.extract_strided_slice %139 {offsets = [0, 256], sizes = [8, 128], strides = [1, 1]} : vector<8x384xf32> to vector<8x128xf32>
    %163 = vector.broadcast %8 : vector<1x128xf32> to vector<8x128xf32>
    %164 = arith.addf %162, %163 : vector<8x128xf32>
    %165 = vector.extract_strided_slice %141 {offsets = [0, 256], sizes = [8, 128], strides = [1, 1]} : vector<8x384xf32> to vector<8x128xf32>
    %166 = vector.broadcast %9 : vector<1x128xf32> to vector<8x128xf32>
    %167 = arith.addf %165, %166 : vector<8x128xf32>
    %168 = arith.mulf %151, %167 : vector<8x128xf32>
    %169 = arith.addf %164, %168 : vector<8x128xf32>
    %170 = math.tanh %169 : vector<8x128xf32>
    %cst_67 = arith.constant 1.000000e+00 : f32
    %171 = vector.broadcast %cst_67 : f32 to vector<8x128xf32>
    %172 = arith.subf %171, %161 : vector<8x128xf32>
    %173 = arith.mulf %172, %170 : vector<8x128xf32>
    %174 = arith.mulf %161, %128 : vector<8x128xf32>
    %175 = arith.addf %173, %174 : vector<8x128xf32>
    %c0_68 = arith.constant 0 : index
    %c0_69 = arith.constant 0 : index
    %176 = vector.load %arg8[%c0_68, %c0_69] : memref<128x128xf32, #tpu.memory_space<vmem>>, vector<128x128xf32>
    %cst_70 = arith.constant dense<0.000000e+00> : vector<8x128xf32>
    %177 = tpu.matmul %175, %176, %cst_70 {dimension_numbers = #tpu.dot_dimension_numbers<[1], [0], [0], [1], [0, 0, 1, 1], [], []>} : vector<8x128xf32>, vector<128x128xf32>, vector<8x128xf32> -> vector<8x128xf32>
    %c0_71 = arith.constant 0 : index
    %c0_72 = arith.constant 0 : index
    %178 = vector.load %arg9[%c0_71, %c0_72] : memref<1x128xf32, #tpu.memory_space<vmem>>, vector<1x128xf32>
    %179 = vector.broadcast %178 : vector<1x128xf32> to vector<8x128xf32>
    %180 = arith.addf %177, %179 : vector<8x128xf32>
    %181 = arith.index_cast %c2_i32 : i32 to index
    %c0_73 = arith.constant 0 : index
    %c0_74 = arith.constant 0 : index
    %182 = vector.load %arg10[%181, %c0_73, %c0_74] : memref<4x8x128xf32, #tpu.memory_space<vmem>>, vector<1x8x128xf32>
    %183 = vector.shape_cast %182 : vector<1x8x128xf32> to vector<8x128xf32>
    %184 = vector.shape_cast %180 : vector<8x128xf32> to vector<1x8x128xf32>
    tpu.vector_store %arg10[%181, %c0_73, %c0_74], %184 {strides = array<i32>} : memref<4x8x128xf32, #tpu.memory_space<vmem>>, vector<1x8x128xf32>,
    %185 = arith.addi %4, %c2_i32 : i32
    %186 = arith.cmpi slt, %185, %3 : i32
    %187 = arith.select %186, %175, %128 : vector<8x128xf32>
    %c3_i32 = arith.constant 3 : i32
    %188 = arith.index_cast %c3_i32 : i32 to index
    %c0_75 = arith.constant 0 : index
    %c0_76 = arith.constant 0 : index
    %189 = vector.load %arg2[%188, %c0_75, %c0_76] : memref<4x8x48xf32, #tpu.memory_space<vmem>>, vector<1x8x48xf32>
    %190 = vector.shape_cast %189 : vector<1x8x48xf32> to vector<8x48xf32>
    %c0_77 = arith.constant 0 : index
    %c0_78 = arith.constant 0 : index
    %191 = vector.load %arg4[%c0_77, %c0_78] : memref<48x128xf32, #tpu.memory_space<vmem>>, vector<48x128xf32>
    %cst_79 = arith.constant dense<0.000000e+00> : vector<8x128xf32>
    %192 = tpu.matmul %190, %191, %cst_79 {dimension_numbers = #tpu.dot_dimension_numbers<[1], [0], [0], [1], [0, 0, 1, 1], [], []>} : vector<8x48xf32>, vector<48x128xf32>, vector<8x128xf32> -> vector<8x128xf32>
    %193 = vector.broadcast %5 : vector<1x128xf32> to vector<8x128xf32>
    %194 = arith.addf %192, %193 : vector<8x128xf32>
    %cst_80 = arith.constant 0.000000e+00 : f32
    %195 = vector.broadcast %cst_80 : f32 to vector<8x128xf32>
    %196 = arith.maximumf %194, %195 : vector<8x128xf32>
    %c0_81 = arith.constant 0 : index
    %c0_82 = arith.constant 0 : index
    %197 = vector.load %arg5[%c0_81, %c0_82] : memref<128x384xf32, #tpu.memory_space<vmem>>, vector<128x384xf32>
    %cst_83 = arith.constant dense<0.000000e+00> : vector<8x384xf32>
    %198 = tpu.matmul %196, %197, %cst_83 {dimension_numbers = #tpu.dot_dimension_numbers<[1], [0], [0], [1], [0, 0, 1, 1], [], []>} : vector<8x128xf32>, vector<128x384xf32>, vector<8x384xf32> -> vector<8x384xf32>
    %c0_84 = arith.constant 0 : index
    %c0_85 = arith.constant 0 : index
    %199 = vector.load %arg6[%c0_84, %c0_85] : memref<128x384xf32, #tpu.memory_space<vmem>>, vector<128x384xf32>
    %cst_86 = arith.constant dense<0.000000e+00> : vector<8x384xf32>
    %200 = tpu.matmul %187, %199, %cst_86 {dimension_numbers = #tpu.dot_dimension_numbers<[1], [0], [0], [1], [0, 0, 1, 1], [], []>} : vector<8x128xf32>, vector<128x384xf32>, vector<8x384xf32> -> vector<8x384xf32>
    %201 = vector.extract_strided_slice %198 {offsets = [0, 0], sizes = [8, 128], strides = [1, 1]} : vector<8x384xf32> to vector<8x128xf32>
    %202 = vector.extract_strided_slice %200 {offsets = [0, 0], sizes = [8, 128], strides = [1, 1]} : vector<8x384xf32> to vector<8x128xf32>
    %203 = arith.addf %201, %202 : vector<8x128xf32>
    %204 = vector.broadcast %6 : vector<1x128xf32> to vector<8x128xf32>
    %205 = arith.addf %203, %204 : vector<8x128xf32>
    %206 = arith.negf %205 : vector<8x128xf32>
    %207 = math.exp %206 : vector<8x128xf32>
    %cst_87 = arith.constant 1.000000e+00 : f32
    %208 = vector.broadcast %cst_87 : f32 to vector<8x128xf32>
    %209 = arith.addf %208, %207 : vector<8x128xf32>
    %210 = arith.divf %208, %209 : vector<8x128xf32>
    %211 = vector.extract_strided_slice %198 {offsets = [0, 128], sizes = [8, 128], strides = [1, 1]} : vector<8x384xf32> to vector<8x128xf32>
    %212 = vector.extract_strided_slice %200 {offsets = [0, 128], sizes = [8, 128], strides = [1, 1]} : vector<8x384xf32> to vector<8x128xf32>
    %213 = arith.addf %211, %212 : vector<8x128xf32>
    %214 = vector.broadcast %7 : vector<1x128xf32> to vector<8x128xf32>
    %215 = arith.addf %213, %214 : vector<8x128xf32>
    %216 = arith.negf %215 : vector<8x128xf32>
    %217 = math.exp %216 : vector<8x128xf32>
    %cst_88 = arith.constant 1.000000e+00 : f32
    %218 = vector.broadcast %cst_88 : f32 to vector<8x128xf32>
    %219 = arith.addf %218, %217 : vector<8x128xf32>
    %220 = arith.divf %218, %219 : vector<8x128xf32>
    %221 = vector.extract_strided_slice %198 {offsets = [0, 256], sizes = [8, 128], strides = [1, 1]} : vector<8x384xf32> to vector<8x128xf32>
    %222 = vector.broadcast %8 : vector<1x128xf32> to vector<8x128xf32>
    %223 = arith.addf %221, %222 : vector<8x128xf32>
    %224 = vector.extract_strided_slice %200 {offsets = [0, 256], sizes = [8, 128], strides = [1, 1]} : vector<8x384xf32> to vector<8x128xf32>
    %225 = vector.broadcast %9 : vector<1x128xf32> to vector<8x128xf32>
    %226 = arith.addf %224, %225 : vector<8x128xf32>
    %227 = arith.mulf %210, %226 : vector<8x128xf32>
    %228 = arith.addf %223, %227 : vector<8x128xf32>
    %229 = math.tanh %228 : vector<8x128xf32>
    %cst_89 = arith.constant 1.000000e+00 : f32
    %230 = vector.broadcast %cst_89 : f32 to vector<8x128xf32>
    %231 = arith.subf %230, %220 : vector<8x128xf32>
    %232 = arith.mulf %231, %229 : vector<8x128xf32>
    %233 = arith.mulf %220, %187 : vector<8x128xf32>
    %234 = arith.addf %232, %233 : vector<8x128xf32>
    %c0_90 = arith.constant 0 : index
    %c0_91 = arith.constant 0 : index
    %235 = vector.load %arg8[%c0_90, %c0_91] : memref<128x128xf32, #tpu.memory_space<vmem>>, vector<128x128xf32>
    %cst_92 = arith.constant dense<0.000000e+00> : vector<8x128xf32>
    %236 = tpu.matmul %234, %235, %cst_92 {dimension_numbers = #tpu.dot_dimension_numbers<[1], [0], [0], [1], [0, 0, 1, 1], [], []>} : vector<8x128xf32>, vector<128x128xf32>, vector<8x128xf32> -> vector<8x128xf32>
    %c0_93 = arith.constant 0 : index
    %c0_94 = arith.constant 0 : index
    %237 = vector.load %arg9[%c0_93, %c0_94] : memref<1x128xf32, #tpu.memory_space<vmem>>, vector<1x128xf32>
    %238 = vector.broadcast %237 : vector<1x128xf32> to vector<8x128xf32>
    %239 = arith.addf %236, %238 : vector<8x128xf32>
    %240 = arith.index_cast %c3_i32 : i32 to index
    %c0_95 = arith.constant 0 : index
    %c0_96 = arith.constant 0 : index
    %241 = vector.load %arg10[%240, %c0_95, %c0_96] : memref<4x8x128xf32, #tpu.memory_space<vmem>>, vector<1x8x128xf32>
    %242 = vector.shape_cast %241 : vector<1x8x128xf32> to vector<8x128xf32>
    %243 = vector.shape_cast %239 : vector<8x128xf32> to vector<1x8x128xf32>
    tpu.vector_store %arg10[%240, %c0_95, %c0_96], %243 {strides = array<i32>} : memref<4x8x128xf32, #tpu.memory_space<vmem>>, vector<1x8x128xf32>,
    %244 = arith.addi %4, %c3_i32 : i32
    %245 = arith.cmpi slt, %244, %3 : i32
    %246 = arith.select %245, %234, %187 : vector<8x128xf32>
    %c4_i32_97 = arith.constant 4 : i32
    %c0_98 = arith.constant 0 : index
    %c0_99 = arith.constant 0 : index
    %247 = vector.load %arg12[%c0_98, %c0_99] : memref<8x128xf32, #tpu.memory_space<vmem>>, vector<8x128xf32>
    tpu.vector_store %arg12[%c0_98, %c0_99], %246 {strides = array<i32>} : memref<8x128xf32, #tpu.memory_space<vmem>>, vector<8x128xf32>,
    %c1_i32_100 = arith.constant 1 : i32
    %248 = arith.cmpi eq, %arg0, %c1_i32_100 : i32
    %249 = arith.extui %248 : i1 to i32
    %c0_i32_101 = arith.constant 0 : i32
    %250 = arith.cmpi ne, %249, %c0_i32_101 : i32
    scf.if %250 {
      %c0_102 = arith.constant 0 : index
      %c0_103 = arith.constant 0 : index
      %251 = vector.load %arg11[%c0_102, %c0_103] : memref<8x128xf32, #tpu.memory_space<vmem>>, vector<8x128xf32>
      tpu.vector_store %arg11[%c0_102, %c0_103], %246 {strides = array<i32>} : memref<8x128xf32, #tpu.memory_space<vmem>>, vector<8x128xf32>,
    } else {
    }
    return
  }
  func.func @transform_0(%arg0: i32, %arg1: memref<1xi32, #tpu.memory_space<smem>>) -> (i32, i32, i32) {
    %c0_i32 = arith.constant 0 : i32
    %c0_i32_0 = arith.constant 0 : i32
    %c0_i32_1 = arith.constant 0 : i32
    return %arg0, %c0_i32, %c0_i32_0 : i32, i32, i32
  }
  func.func @transform_1(%arg0: i32, %arg1: memref<1xi32, #tpu.memory_space<smem>>) -> (i32, i32) {
    %c0_i32 = arith.constant 0 : i32
    %c0_i32_0 = arith.constant 0 : i32
    %c0_i32_1 = arith.constant 0 : i32
    return %c0_i32, %c0_i32_0 : i32, i32
  }
  func.func @transform_2(%arg0: i32, %arg1: memref<1xi32, #tpu.memory_space<smem>>) -> (i32, i32) {
    %c0_i32 = arith.constant 0 : i32
    %c0_i32_0 = arith.constant 0 : i32
    %c0_i32_1 = arith.constant 0 : i32
    return %c0_i32, %c0_i32_0 : i32, i32
  }
  func.func @transform_3(%arg0: i32, %arg1: memref<1xi32, #tpu.memory_space<smem>>) -> (i32, i32) {
    %c0_i32 = arith.constant 0 : i32
    %c0_i32_0 = arith.constant 0 : i32
    %c0_i32_1 = arith.constant 0 : i32
    return %c0_i32, %c0_i32_0 : i32, i32
  }
  func.func @transform_4(%arg0: i32, %arg1: memref<1xi32, #tpu.memory_space<smem>>) -> (i32, i32) {
    %c0_i32 = arith.constant 0 : i32
    %c0_i32_0 = arith.constant 0 : i32
    %c0_i32_1 = arith.constant 0 : i32
    return %c0_i32, %c0_i32_0 : i32, i32
  }
  func.func @transform_5(%arg0: i32, %arg1: memref<1xi32, #tpu.memory_space<smem>>) -> (i32, i32) {
    %c0_i32 = arith.constant 0 : i32
    %c0_i32_0 = arith.constant 0 : i32
    %c0_i32_1 = arith.constant 0 : i32
    return %c0_i32, %c0_i32_0 : i32, i32
  }
  func.func @transform_6(%arg0: i32, %arg1: memref<1xi32, #tpu.memory_space<smem>>) -> (i32, i32) {
    %c0_i32 = arith.constant 0 : i32
    %c0_i32_0 = arith.constant 0 : i32
    %c0_i32_1 = arith.constant 0 : i32
    return %c0_i32, %c0_i32_0 : i32, i32
  }
  func.func @transform_7(%arg0: i32, %arg1: memref<1xi32, #tpu.memory_space<smem>>) -> (i32, i32) {
    %c0_i32 = arith.constant 0 : i32
    %c0_i32_0 = arith.constant 0 : i32
    %c0_i32_1 = arith.constant 0 : i32
    return %c0_i32, %c0_i32_0 : i32, i32
  }
  func.func @transform_8(%arg0: i32, %arg1: memref<1xi32, #tpu.memory_space<smem>>) -> (i32, i32, i32) {
    %c0_i32 = arith.constant 0 : i32
    %c0_i32_0 = arith.constant 0 : i32
    %c0_i32_1 = arith.constant 0 : i32
    return %arg0, %c0_i32, %c0_i32_0 : i32, i32, i32
  }
  func.func @transform_9(%arg0: i32, %arg1: memref<1xi32, #tpu.memory_space<smem>>) -> (i32, i32) {
    %c0_i32 = arith.constant 0 : i32
    %c0_i32_0 = arith.constant 0 : i32
    %c0_i32_1 = arith.constant 0 : i32
    return %c0_i32, %c0_i32_0 : i32, i32
  }
}

</mosaic_0001>

<bundles_post_ra>
// kernel: tpu_custom_call.1
= control target key start
LH: loop header
LB: loop body
LE: loop exit
PB: predicated region body
PF: predicated region fallthrough
CT: control target
= control target key end

     0   :  { %s5935_s0 = inlined_call_operand.<no memory space> [shape: s32[1], index: 0, kind: input, shape index: {}]   ;;  %s5936_s1 = inlined_call_operand.hbm [shape: f32[8,8,48], index: 1, kind: input, shape index: {}]   ;;  %s5937_s2 = inlined_call_operand.hbm [shape: f32[8,128], index: 2, kind: input, shape index: {}]   ;;  %s5938_s3 = inlined_call_operand.hbm [shape: f32[48,128], index: 3, kind: input, shape index: {}]   ;;  %s5939_s4 = inlined_call_operand.hbm [shape: f32[128,384], index: 4, kind: input, shape index: {}]   ;;  %s5940_s5 = inlined_call_operand.hbm [shape: f32[128,384], index: 5, kind: input, shape index: {}]   ;;  %s5941_s6 = inlined_call_operand.vmem [shape: f32[8,128], index: 6, kind: input, shape index: {}]   ;;  %s5942_s7 = inlined_call_operand.hbm [shape: f32[128,128], index: 7, kind: input, shape index: {}]   ;;  %s5943_s8 = inlined_call_operand.vmem [shape: f32[1,128], index: 8, kind: input, shape index: {}]   ;;  %s5944_s9 = inlined_call_operand.hbm [shape: f32[8,8,128], index: 9, kind: output, shape index: {0}]   ;;  %s5945_s10 = inlined_call_operand.hbm [shape: f32[8,128], index: 10, kind: output, shape index: {1}]  }
   0x1   :  { %5955 = sst [smem:[#allocation25_spill]] %s5937_s2 }
   0x2   :  { %5956 = sst [smem:[#allocation26_spill]] %s5939_s4 }
   0x3   :  { %5957 = sst [smem:[#allocation27_spill]] %s5945_s10 }
   0x4   :  { %16 = sst [smem:[#allocation4]] %s5935_s0 }
   0x5   :  { %17 = vsyncpa [#allocation6], 0 }
   0x6   :  { %19 = vsyncpa [#allocation6 + $0x1], 0 }
   0x7   :  { %20 = vsyncpa [#allocation9], 0 }
   0x8   :  { %21 = vsyncpa [#allocation12], 0 }
   0x9   :  { %22 = vsyncpa [#allocation15], 0 }
   0xa   :  { %23 = vsyncpa [#allocation7], 0 }
   0xb   :  { %25 = vsyncpa [#allocation7 + $0x1], 0 }
   0xc   :  { %26 = vsyncpa [#allocation18], 0  ;;  %s4835_s15 = smov 0   ;;  %s4837_s16 = smov 0  }
   0xd   :  { %s4839_s17 = smov 0   ;;  %s4841_s18 = smov 0  }
   0xe LB: > { %s4760_s0 = smov [#allocation8]   ;;  %s4856_s20 = sadd.s32 4294967295, %s4758_s18   ;;  %s4758_s18 = sphi %s4841_s18, %s5992_s18   ;;  %s4754_s17 = sphi %s4839_s17, %s5991_s17   ;;  %s4750_s16 = sphi %s4837_s16, %s5990_s16   ;;  %s4746_s15 = sphi %s4835_s15, %s5989_s15  }
   0xf   : > { %s270_s19 = sshll.u32 %s4760_s0, 4  ;;  %p2965_p0 = scmp.ge.s32.totalorder %s4758_s18, 1  ;;  %s271_s19 = int_to_ptr.vmem [resolvable:$true] %s270_s19 }
  0x10   : > { %p5946_p1 = scmp.eq.s32.totalorder %s4856_s20, 0  ;;  %p257_p2 = scmp.lt.s32.totalorder %s4758_s18, 3 }
  0x11   : > { %s4761_s22 = smov [#allocation11]   ;;  %s4762_s25 = smov [#allocation10]  }
  0x12   : > { %p4862_p4 = pnand %p2965_p0, %p257_p2  ;;  %s293_s23 = sshll.u32 %s4761_s22, 4  ;;  %s4869_s23 = int_to_ptr.vmem [resolvable:$true] %s293_s23 }
  0x13   : > { %s280_s26 = sshll.u32 %s4762_s25, 4  ;;  %s5960_s2 = sld [smem:[#allocation25_spill]]  ;;  %s4877_s26 = int_to_ptr.vmem [resolvable:$true] %s280_s26 }
  0x14   : > { %s5958_s21 = scalar_select %p4862_p4, 1, 0 }
  0x15   : > { %p4350_p6 = pneg %p4862_p4 }
  0x17   : > { %p4873_p7 = pnand %p4350_p6, %p5946_p1 }
  0x19   : > { %s4480_s29 = scalar_lea.hbm %s5960_s2, 128  ;;  %p4887_p9 = pneg %p4873_p7 }
  0x1a   : > { %p4481_p8 = scmp.ne.s32.totalorder %s5960_s2, %s4480_s29  ;;  %p4487_p12 = scmp.lt.u32.totalorder %s4480_s29, %s5960_s2 }
  0x1c   : > { %p4483_p10 = pnand %p4887_p9, %p4481_p8 }
  0x1e   : > { %p4484_p11 = pneg %p4483_p10 }
  0x20   : > { %p4489_p13 = pnand %p4487_p12, %p4484_p11 }
  0x22   : > { %4492 = shalt.err (!%p4489_p13)
}
  0x23   : > { %s4493_s0 = scalar_lea.vmem %s271_s19, 128  ;;  %p4501_p5 = scmp.lt.s32.totalorder %s271_s19, %s271_s19 }
  0x24   : > { %p4494_p0 = scmp.ne.s32.totalorder %s271_s19, %s4493_s0  ;;  %p4502_p3 = scmp.lt.s32.totalorder %s4493_s0, %s4493_s0 }
  0x26   : > { %p4496_p2 = pnand %p4494_p0, %p4887_p9  ;;  %p4503_p1 = por %p4502_p3, %p4501_p5 }
  0x28   : > { %p4497_p6 = pneg %p4496_p2 }
  0x2a   : > { %p4504_p4 = pnand %p4503_p1, %p4497_p6 }
  0x2c   : > { %4507 = shalt.err (!%p4504_p4)
}
  0x2d   : > { %4353 = dma.hbm_to_vmem [thread:$0]  (!%p4873_p7), %s5960_s2, 128, %s271_s19, [#allocation9]  }
  0x2e   : > { %s5962_s4 = sld [smem:[#allocation26_spill]] }
  0x34   : > { %s4508_s29 = scalar_lea.hbm %s5962_s4, 6144 }
  0x35   : > { %p4509_p8 = scmp.ne.s32.totalorder %s5962_s4, %s4508_s29  ;;  %p4515_p1 = scmp.lt.u32.totalorder %s4508_s29, %s5962_s4 }
  0x37   : > { %p4511_p10 = pnand %p4509_p8, %p4887_p9 }
  0x39   : > { %p4512_p3 = pneg %p4511_p10 }
  0x3b   : > { %p4517_p4 = pnand %p4515_p1, %p4512_p3 }
  0x3d   : > { %4520 = shalt.err (!%p4517_p4)
}
  0x3e   : > { %s4521_s19 = scalar_lea.vmem %s4869_s23, 6144  ;;  %p4529_p13 = scmp.lt.s32.totalorder %s4869_s23, %s4869_s23 }
  0x3f   : > { %p4522_p5 = scmp.ne.s32.totalorder %s4869_s23, %s4521_s19  ;;  %p4530_p0 = scmp.lt.s32.totalorder %s4521_s19, %s4521_s19 }
  0x41   : > { %p4524_p11 = pnand %p4522_p5, %p4887_p9  ;;  %p4531_p2 = por %p4530_p0, %p4529_p13 }
  0x43   : > { %p4525_p12 = pneg %p4524_p11 }
  0x45   : > { %p4532_p6 = pnand %p4531_p2, %p4525_p12 }
  0x47   : > { %4535 = shalt.err (!%p4532_p6)
}
  0x48   : > { %s5948_s0 = smov 384   ;;  %s5949_s22 = smov 24  }
  0x49   : > { %4359 = dma.hbm_to_vmem [thread:$0]  (!%p4873_p7), %s5962_s4, 6144, %s4869_s23, [#allocation12], %s5948_s0, %s5948_s0, %s5949_s22  }
  0x4a   : > { %s4536_s30 = scalar_lea.hbm %s5938_s3, 768 }
  0x4b   : > { %p4537_p8 = scmp.ne.s32.totalorder %s5938_s3, %s4536_s30  ;;  %p4543_p1 = scmp.lt.u32.totalorder %s4536_s30, %s5938_s3 }
  0x4d   : > { %p4539_p10 = pnand %p4537_p8, %p4887_p9 }
  0x4f   : > { %p4540_p3 = pneg %p4539_p10 }
  0x51   : > { %p4545_p4 = pnand %p4543_p1, %p4540_p3 }
  0x53   : > { %4548 = shalt.err (!%p4545_p4)
}
  0x54   : > { %s4549_s23 = scalar_lea.vmem %s4877_s26, 768  ;;  %p4557_p13 = scmp.lt.s32.totalorder %s4877_s26, %s4877_s26 }
  0x55   : > { %p4550_p5 = scmp.ne.s32.totalorder %s4877_s26, %s4549_s23  ;;  %p4558_p0 = scmp.lt.s32.totalorder %s4549_s23, %s4549_s23 }
  0x57   : > { %p4552_p11 = pnand %p4550_p5, %p4887_p9  ;;  %p4559_p2 = por %p4558_p0, %p4557_p13 }
  0x59   : > { %p4553_p12 = pneg %p4552_p11 }
  0x5b   : > { %p4560_p6 = pnand %p4559_p2, %p4553_p12 }
  0x5d   : > { %4563 = shalt.err (!%p4560_p6)
}
  0x5e   : > { %s4765_s25 = smov 128   ;;  %s4766_s27 = smov 8  }
  0x5f   : > { %4356 = dma.hbm_to_vmem [thread:$0]  (!%p4873_p7), %s5938_s3, 768, %s4877_s26, [#allocation9], %s4765_s25, %s4765_s25, %s4766_s27  }
  0x60   : > { %s4767_s30 = smov [#allocation13]   ;;  %s4768_s13 = smov [#allocation14]  }
  0x61   : > { %s306_s11 = sshll.u32 %s4767_s30, 4  ;;  %s322_s14 = sshll.u32 %s4768_s13, 4  ;;  %s307_s11 = int_to_ptr.vmem [resolvable:$true] %s306_s11  ;;  %s323_s14 = int_to_ptr.vmem [resolvable:$true] %s322_s14 }
  0x62   : > { %s4564_s0 = scalar_lea.hbm %s5940_s5, 6144 }
  0x63   : > { %p4565_p8 = scmp.ne.s32.totalorder %s5940_s5, %s4564_s0  ;;  %p4571_p1 = scmp.lt.u32.totalorder %s4564_s0, %s5940_s5 }
  0x65   : > { %p4567_p10 = pnand %p4565_p8, %p4887_p9 }
  0x67   : > { %p4568_p3 = pneg %p4567_p10 }
  0x69   : > { %p4573_p4 = pnand %p4571_p1, %p4568_p3 }
  0x6b   : > { %4576 = shalt.err (!%p4573_p4)
}
  0x6c   : > { %s4577_s26 = scalar_lea.vmem %s307_s11, 6144  ;;  %p4585_p13 = scmp.lt.s32.totalorder %s307_s11, %s307_s11 }
  0x6d   : > { %p4578_p5 = scmp.ne.s32.totalorder %s307_s11, %s4577_s26  ;;  %p4586_p0 = scmp.lt.s32.totalorder %s4577_s26, %s4577_s26 }
  0x6f   : > { %p4580_p11 = pnand %p4578_p5, %p4887_p9  ;;  %p4587_p2 = por %p4586_p0, %p4585_p13 }
  0x71   : > { %p4581_p12 = pneg %p4580_p11 }
  0x73   : > { %p4588_p6 = pnand %p4587_p2, %p4581_p12 }
  0x75   : > { %4591 = shalt.err (!%p4588_p6)
}
  0x76   : > { %s5963_s2 = smov 24   ;;  %s5964_s22 = smov 384  }
  0x77   : > { %4362 = dma.hbm_to_vmem [thread:$0]  (!%p4873_p7), %s5940_s5, 6144, %s307_s11, [#allocation12], %s5964_s22, %s5964_s22, %s5963_s2  }
  0x78   : > { %s4592_s29 = scalar_lea.hbm %s5942_s7, 2048 }
  0x79   : > { %p4593_p8 = scmp.ne.s32.totalorder %s5942_s7, %s4592_s29  ;;  %p4599_p1 = scmp.lt.u32.totalorder %s4592_s29, %s5942_s7 }
  0x7b   : > { %p4595_p10 = pnand %p4593_p8, %p4887_p9 }
  0x7d   : > { %p4596_p3 = pneg %p4595_p10 }
  0x7f   : > { %p4601_p4 = pnand %p4599_p1, %p4596_p3 }
  0x81   : > { %4604 = shalt.err (!%p4601_p4)
}
  0x82   : > { %s4605_s26 = scalar_lea.vmem %s323_s14, 2048  ;;  %p4613_p13 = scmp.lt.s32.totalorder %s323_s14, %s323_s14 }
  0x83   : > { %p4606_p5 = scmp.ne.s32.totalorder %s323_s14, %s4605_s26  ;;  %p4614_p0 = scmp.lt.s32.totalorder %s4605_s26, %s4605_s26 }
  0x85   : > { %p4608_p11 = pnand %p4606_p5, %p4887_p9  ;;  %p4615_p2 = por %p4614_p0, %p4613_p13 }
  0x87   : > { %p4609_p12 = pneg %p4608_p11 }
  0x89   : > { %p4616_p6 = pnand %p4615_p2, %p4609_p12 }
  0x8b   : > { %4619 = shalt.err (!%p4616_p6)
}
  0x8c   : > { %4365 = dma.hbm_to_vmem [thread:$0]  (!%p4873_p7), %s5942_s7, 2048, %s323_s14, [#allocation15], %s4765_s25, %s4765_s25, %s4766_s27  }
  0x8d   : > { %s2964_s24 = sadd.s32 4294967294, %s4758_s18   ;;  %s4999_s12 = sadd.s32 1, %s4758_s18  }
  0x8e   : > { %s39_s22 = sadd.s32 1, %s4754_s17  ;;  %s36_s4 = ssub.s32 %s4758_s18, %s4999_s12 }
  0x8f   : > { %p46_p9 = scmp.ne.s32.totalorder %s4754_s17, %s4750_s16  ;;  %p37_p8 = scmp.eq.s32.totalorder %s36_s4, 0 }
  0x90   : > { %p47_p10 = scmp.eq.s32.totalorder %s4758_s18, 0  ;;  %p52_p3 = scmp.ne.s32.totalorder %s4750_s16, %s4746_s15 }
  0x91   : > { %p5951_p1 = scmp.eq.s32.totalorder %s4856_s20, 1  ;;  %p5965_p5 = scmp.eq.s32.totalorder %s4856_s20, 0 }
  0x92   : > { %s5011_s10 = scalar_select %p37_p8, %s4754_s17, %s39_s22  }
  0x93   : > { %p48_p4 = por %p47_p10, %p46_p9  ;;  %p5015_p11 = por %p5965_p5, %p52_p3 }
  0x94   : > { %p5021_p7 = por %p5951_p1, %p46_p9  ;;  %p229_p12 = scmp.eq.s32.totalorder %s2964_s24, 1 }
  0x95   : > { %p4379_p13 = scmp.lt.s32.totalorder %s4758_s18, 2  ;;  %s339_s28 = sand.u32 1, %s4754_s17  }
  0x96   : > { %s5967_s14 = scalar_select %p5021_p7, 1, 0 }
  0x97   : > { %p5027_p0 = por %p229_p12, %p52_p3  ;;  %s2972_s30 = sshll.u32 %s339_s28, 5 }
  0x98   : > { %s3020_s13 = sshll.u32 %s4758_s18, 9  ;;  %s343_s11 = scalar_lea.vmem [#allocation5], %s2972_s30 }
  0x99   : > { %s5968_s29 = scalar_select %p5027_p0, 1, 0 }
  0x9a   : > { %s5035_s26 = scalar_lea.hbm %s5936_s1, %s3020_s13  ;;  %s350_s2 = sshll.u32 %s343_s11, 4  ;;  %s5041_s2 = int_to_ptr.vmem [resolvable:$true] %s350_s2 }
  0x9b   : > { %p5037_p2 = pnand %p4379_p13, %p48_p4  ;;  %s5043_s22 = scalar_lea.sflag [#allocation6], %s339_s28 }
  0x9c   : > { %s4620_s4 = scalar_lea.hbm %s5035_s26, 512  ;;  %s4625_s19 = scalar_lea.hbm %s5936_s1, 1024 }
  0x9d   : > { %p4621_p6 = scmp.ne.s32.totalorder %s5035_s26, %s4620_s4  ;;  %p4622_p9 = pneg %p5037_p2 }
  0x9e   : > { %p4626_p3 = scmp.lt.u32.totalorder %s5035_s26, %s5936_s1  ;;  %p4627_p4 = scmp.lt.u32.totalorder %s4625_s19, %s4620_s4 }
  0x9f   : > { %p4623_p8 = pnand %p4622_p9, %p4621_p6  ;;  %p4629_p12 = scmp.lt.u32.totalorder %s4620_s4, %s5035_s26 }
  0xa0   : > { %p4628_p5 = por %p4627_p4, %p4626_p3 }
  0xa1   : > { %p4624_p10 = pneg %p4623_p8 }
  0xa2   : > { %p4630_p13 = por %p4629_p12, %p4628_p5 }
  0xa4   : > { %p4631_p1 = pnand %p4630_p13, %p4624_p10 }
  0xa6   : > { %4634 = shalt.err (!%p4631_p1)
}
  0xa7   : > { %s4635_s28 = scalar_lea.vmem %s5041_s2, 512  ;;  %s4769_s30 = smov [#allocation5]  }
  0xa8   : > { %p4636_p6 = scmp.ne.s32.totalorder %s5041_s2, %s4635_s28  ;;  %s4640_s13 = sshll.u32 %s4769_s30, 4  ;;  %s4641_s13 = int_to_ptr.vmem [resolvable:$false] %s4640_s13 }
  0xa9   : > { %s4642_s23 = scalar_lea.vmem %s4641_s13, 1024  ;;  %p4643_p7 = scmp.lt.s32.totalorder %s5041_s2, %s4641_s13 }
  0xaa   : > { %p4638_p8 = pnand %p4636_p6, %p4622_p9  ;;  %p4644_p3 = scmp.lt.s32.totalorder %s4642_s23, %s4635_s28 }
  0xac   : > { %p4639_p0 = pneg %p4638_p8  ;;  %p4645_p4 = por %p4644_p3, %p4643_p7 }
  0xae   : > { %p4646_p5 = pnand %p4645_p4, %p4639_p0 }
  0xb0   : > { %4649 = shalt.err (!%p4646_p5)
}
  0xb1   : > { %4369 = dma.hbm_to_vmem [thread:$0]  (!%p5037_p2), %s5035_s26, 512, %s5041_s2, %s5043_s22, %s4765_s25, %s4765_s25, %s4766_s27  }
  0xb2   : > { %p5970_p1 = scmp.ne.s32.totalorder %s5958_s21, 0 }
  0xb3   : > { %s5077_s4 = sand.u32 (!%p5970_p1), 1, %s4750_s16  }
  0xb4   : > { %362 = sbr.rel (%p5970_p1) target bundleno = 1895 (0x767), region = 52  ;;  %s2976_s19 = sshll.u32 (!%p5970_p1), %s5077_s4, 5 }
  0xb5   : > { %s365_s11 = scalar_lea.sflag (!%p5970_p1), [#allocation6], %s5077_s4  ;;  %s5081_s28 = scalar_lea.vmem (!%p5970_p1), [#allocation5], %s2976_s19 }
  0xbb   : > { %4721 = dma.done.wait (%p5015_p11), %s365_s11, 512  }
  0xbc   : > { %4723 = vsyncadd (%p5015_p11), %s365_s11, 4294966784  ;;  %p5971_p7 = scmp.eq.s32.totalorder %s4856_s20, 0 }
  0xbe   : > { %4725 = dma.done.wait (%p5971_p7), [#allocation9], 896   ;;  %p5972_p0 = pmov %p5971_p7 }
  0xc0   : > { %4727 = vsyncadd (%p5972_p0), [#allocation9], 4294966400  ;;  %p5973_p2 = pmov %p5972_p0 }
  0xc1   : > { %p5974_p9 = pmov %p5972_p0 }
  0xc2   : > { %4729 = dma.done.wait (%p5973_p2), [#allocation12], 12288  }
  0xc3   : > { %4731 = vsyncadd (%p5974_p9), [#allocation12], 4294955008  ;;  %p5975_p10 = pmov %p5972_p0 }
  0xc4   : > { %p5976_p12 = pmov %p5972_p0 }
  0xc5   : > { %4733 = dma.done.wait (%p5975_p10), [#allocation15], 2048  }
  0xc6   : > { %4735 = vsyncadd (%p5976_p12), [#allocation15], 4294965248  ;;  %s5099_s21 = scalar_lea.vmem [#allocation16], %s2976_s19  ;;  %p5977_p11 = scmp.ne.s32.totalorder %s4856_s20, 0 }
  0xc7   : > { %v429_v0 = vld [vmem:[#allocation8] sm:$0xff] (!%p5977_p11) }
  0xc8   : > { %428 = sbr.rel (%p5977_p11) target bundleno = 207 (0xcf), region = 80  ;;  %430 = vst [vmem:[#allocation2] sm:$0xff] (!%p5977_p11), %v429_v0 }
  0xcf PF: > { %v440_v1 = vld [vmem:[#allocation10] sm:$0xff]  ;;  %v441_v2 = vld [vmem:[#allocation10 + $0x8] sm:$0xff]  ;;  %v442_v3 = vld [vmem:[#allocation10 + $0x10] sm:$0xff]  ;;  %v4770_v4 = vmov 0.0|0.0   ;;  %vm4771_vm0 = vmmov 0   ;;  %v5953_v7 = vmov 0.0  }
  0xd0   : > { %3734 = vmatprep.subr.bf16.mxu1 %v4770_v4  ;;  %v5104_v5 = vpack.c.bf16 %v441_v2, %v440_v1  ;;  %v443_v6 = vld [vmem:[#allocation10 + $0x18] sm:$0xff]  ;;  %3266 = vmatprep.mubr.msk.f32.mxu1 %vm4771_vm0, %v5953_v7  ;;  %v527_v9 = vld [vmem:[#allocation11 + $0x10] sm:$0xff]  ;;  %v445_v11 = vld [vmem:[#allocation10 + $0x28] sm:$0xff]  ;;  %vm450_vm1 = vcmask 392192   ;;  %s5393_s19 = sld [smem:[#allocation4]]  ;;  %s5400_s11 = sshll.u32 %s4856_s20, 2 }
  0xd1   : > { %3775 = vmatprep.subr.bf16.mxu0 %v4770_v4  ;;  %3301 = vmatprep.mubr.msk.f32.mxu0 %vm4771_vm0, %v5953_v7  ;;  %v5112_v8 = vpack.c.bf16 %v443_v6, %v442_v3  ;;  %v444_v10 = vld [vmem:[#allocation10 + $0x20] sm:$0xff]  ;;  %v530_v12 = vld [vmem:[#allocation11 + $0x28] sm:$0xff]  ;;  %v529_v14 = vld [vmem:[#allocation11 + $0x20] sm:$0xff]  ;;  %s1623_s26 = sadd.s32 1, %s5400_s11  ;;  %s2209_s30 = sadd.s32 2, %s5400_s11 }
  0xd2   : > { %3736 = vmatpush3.bf16.msra.mxu1 %v5104_v5  ;;  %v526_v13 = vld [vmem:[#allocation11 + $0x8] sm:$0xff]  ;;  %v5115_v15 = vpack.c.bf16 %v530_v12, %v527_v9  ;;  %v533_v16 = vld [vmem:[#allocation11 + $0x40] sm:$0xff]  ;;  %v536_v17 = vld [vmem:[#allocation11 + $0x58] sm:$0xff]  ;;  %v5118_v18 = vpack.c.bf16 %v445_v11, %v444_v10  ;;  %p3012_p4 = scmp.ne.s32.totalorder %s4856_s20, 1 }
  0xd3   : > { %3737 = vmatprep.subr.bf16.mxu1 %v4770_v4  ;;  %v525_v19 = vld [vmem:[#allocation11] sm:$0xff]  ;;  %v5121_v20 = vpack.c.bf16 %v536_v17, %v533_v16  ;;  %v5124_v21 = vpack.c.bf16 %v529_v14, %v526_v13  ;;  %v528_v22 = vld [vmem:[#allocation11 + $0x18] sm:$0xff]  ;;  %v539_v23 = vld [vmem:[#allocation11 + $0x70] sm:$0xff] }
  0xd4   : > { %3777 = vmatpush3.bf16.msra.mxu0 %v5115_v15  ;;  %v542_v24 = vld [vmem:[#allocation11 + $0x88] sm:$0xff]  ;;  %v532_v25 = vld [vmem:[#allocation11 + $0x38] sm:$0xff]  ;;  %v535_v26 = vld [vmem:[#allocation11 + $0x50] sm:$0xff]  ;;  %v5129_v28 = vpack.c.bf16 %v528_v22, %v525_v19 }
  0xd5   : > { %3778 = vmatprep.subr.bf16.mxu0 %v4770_v4  ;;  %v439_v27 = vld [vmem:[%s5081_s28] sm:$0xff]  ;;  %v531_v29 = vld [vmem:[#allocation11 + $0x30] sm:$0xff]  ;;  %v5132_v30 = vpack.c.bf16 %v542_v24, %v539_v23  ;;  %v5135_v31 = vpack.c.bf16 %v535_v26, %v532_v25  ;;  %v545_v33 = vld [vmem:[#allocation11 + $0xa0] sm:$0xff] }
  0xd6   : > { %3739 = vmatpush3.bf16.msra.mxu1 %v5112_v8  ;;  %v534_v32 = vld [vmem:[#allocation11 + $0x48] sm:$0xff]  ;;  %v548_v34 = vld [vmem:[#allocation11 + $0xb8] sm:$0xff]  ;;  %v541_v36 = vld [vmem:[#allocation11 + $0x80] sm:$0xff]  ;;  %p1038_p13 = scmp.lt.s32.totalorder %s5400_s11, %s5393_s19  ;;  %p5612_p6 = scmp.lt.s32.totalorder %s1623_s26, %s5393_s19 }
  0xd7   : > { %3740 = vmatprep.subr.bf16.mxu1 %v4770_v4  ;;  %v538_v35 = vld [vmem:[#allocation11 + $0x68] sm:$0xff]  ;;  %v5140_v37 = vpack.c.bf16 %v534_v32, %v531_v29  ;;  %v537_v38 = vld [vmem:[#allocation11 + $0x60] sm:$0xff]  ;;  %v5143_v39 = vpack.c.bf16 %v548_v34, %v545_v33  ;;  %v540_v41 = vld [vmem:[#allocation11 + $0x78] sm:$0xff]  ;;  %p2210_p8 = scmp.lt.s32.totalorder %s2209_s30, %s5393_s19 }
  0xd8   : > { %3780 = vmatpush3.bf16.msra.mxu0 %v5121_v20  ;;  %v5146_v40 = vpack.c.bf16 %v541_v36, %v538_v35  ;;  %v551_v42 = vld [vmem:[#allocation11 + $0xd0] sm:$0xff]  ;;  %v554_v43 = vld [vmem:[#allocation11 + $0xe8] sm:$0xff]  ;;  %v544_v44 = vld [vmem:[#allocation11 + $0x98] sm:$0xff]  ;;  %v5151_v46 = vpack.c.bf16 %v540_v41, %v537_v38  ;;  %s1039_s25 = scalar_select %p1038_p13, 1, 0 }
  0xd9   : > { %3781 = vmatprep.subr.bf16.mxu0 %v4770_v4  ;;  %v547_v45 = vld [vmem:[#allocation11 + $0xb0] sm:$0xff]  ;;  %v5154_v48 = vpack.c.bf16 %v554_v43, %v551_v42  ;;  %v546_v50 = vld [vmem:[#allocation11 + $0xa8] sm:$0xff]  ;;  %v557_v51 = vld [vmem:[#allocation11 + $0x100] sm:$0xff]  ;;  %s1625_s24 = scalar_select %p5612_p6, 1, 0 }
  0xda   : > { %3742 = vmatpush3.bf16.msra.mxu1 %v5118_v18  ;;  %v543_v47 = vld [vmem:[#allocation11 + $0x90] sm:$0xff]  ;;  %v5157_v49 = vpack.c.bf16 %v547_v45, %v544_v44  ;;  %v560_v52 = vld [vmem:[#allocation11 + $0x118] sm:$0xff]  ;;  %v550_v53 = vld [vmem:[#allocation11 + $0xc8] sm:$0xff]  ;;  %s2211_s13 = scalar_select %p2210_p8, 1, 0 }
  0xdb   : > { %3744 = vmatprep.subr.bf16.mxu1 %v5124_v21  ;;  %v553_v54 = vld [vmem:[#allocation11 + $0xe0] sm:$0xff]  ;;  %v5161_v55 = vpack.c.bf16 %v546_v50, %v543_v47  ;;  %v5164_v57 = vpack.c.bf16 %v560_v52, %v557_v51  ;;  %v552_v59 = vld [vmem:[#allocation11 + $0xd8] sm:$0xff]  ;;  %v563_v60 = vld [vmem:[#allocation11 + $0x130] sm:$0xff] }
  0xdc   : > { %3783 = vmatpush3.bf16.msra.mxu0 %v5132_v30  ;;  %v549_v56 = vld [vmem:[#allocation11 + $0xc0] sm:$0xff]  ;;  %v5167_v58 = vpack.c.bf16 %v553_v54, %v550_v53  ;;  %v566_v61 = vld [vmem:[#allocation11 + $0x148] sm:$0xff]  ;;  %v556_v62 = vld [vmem:[#allocation11 + $0xf8] sm:$0xff] }
  0xdd   : > { %3267 = vmatmul.mubr.msk.f32.vlgmr.msra.gmra.mrb[0].mxu1 %vm450_vm1, %v439_v27  ;;  %3784 = vmatprep.subr.bf16.mxu0 %v4770_v4  ;;  %v559_v63 = vld [vmem:[#allocation11 + $0x110] sm:$0xff]  ;;  %v5171_v0 = vpack.c.bf16 %v552_v59, %v549_v56  ;;  %v5174_v1 = vpack.c.bf16 %v566_v61, %v563_v60  ;;  %v558_v6 = vld [vmem:[#allocation11 + $0x108] sm:$0xff]  ;;  %v565_v10 = vld [vmem:[#allocation11 + $0x140] sm:$0xff] }
  0xde   : > { %3746 = vmatpush1.bf16.msra.mxu1 %v5129_v28  ;;  %637 = vmatprep.mubr.f32.mxu1 %v5953_v7  ;;  %v5177_v2 = vpack.c.bf16 %v559_v63, %v556_v62  ;;  %v555_v3 = vld [vmem:[#allocation11 + $0xf0] sm:$0xff]  ;;  %v562_v9 = vld [vmem:[#allocation11 + $0x128] sm:$0xff]  ;;  %v561_v13 = vld [vmem:[#allocation11 + $0x120] sm:$0xff] }
  0xdf   : > { %3748 = vmatprep.subr.bf16.mxu1 %v5135_v31  ;;  %v5181_v11 = vpack.c.bf16 %v558_v6, %v555_v3  ;;  %v5185_v12 = vpack.c.bf16 %v565_v10, %v562_v9  ;;  %v564_v14 = vld [vmem:[#allocation11 + $0x138] sm:$0xff]  ;;  %v571_v19 = vld [vmem:[#allocation11 + $0x170] sm:$0xff]  ;;  %v570_v24 = vld [vmem:[#allocation11 + $0x168] sm:$0xff] }
  0xe0   : > { %3786 = vmatpush3.bf16.msra.mxu0 %v5143_v39  ;;  %v5189_v16 = vpack.c.bf16 %v564_v14, %v561_v13  ;;  %v568_v17 = vld [vmem:[#allocation11 + $0x158] sm:$0xff]  ;;  %v567_v23 = vld [vmem:[#allocation11 + $0x150] sm:$0xff]  ;;  %v569_v26 = vld [vmem:[#allocation11 + $0x160] sm:$0xff] }
  0xe1   : > { %3787 = vmatprep.subr.bf16.mxu0 %v4770_v4  ;;  %v5193_v22 = vpack.c.bf16 %v571_v19, %v568_v17  ;;  %v5195_v25 = vpack.c.bf16 %v570_v24, %v567_v23  ;;  %v572_v27 = vld [vmem:[#allocation11 + $0x178] sm:$0xff]  ;;  %v715_v32 = vld [vmem:[#allocation13 + $0x8] sm:$0xff]  ;;  %v718_v33 = vld [vmem:[#allocation13 + $0x20] sm:$0xff] }
  0xe2   : > { %3750 = vmatpush1.bf16.msra.mxu1 %v5140_v37  ;;  %v5198_v29 = vpack.c.bf16 %v572_v27, %v569_v26  ;;  %v5202_v34 = vpack.c.bf16 %v718_v33, %v715_v32  ;;  %v5209_v35 = vld [vmem:[%s5941_s6] ss:$0 sm:$0xff]  ;;  %v717_v38 = vld [vmem:[#allocation13 + $0x18] sm:$0xff]  ;;  %v716_v41 = vld [vmem:[#allocation13 + $0x10] sm:$0xff] }
  0xe3   : > { %3752 = vmatprep.subr.bf16.mxu1 %v5146_v40  ;;  %v714_v36 = vld [vmem:[#allocation13] sm:$0xff]  ;;  %v719_v42 = vld [vmem:[#allocation13 + $0x28] sm:$0xff]  ;;  %v721_v44 = vld [vmem:[#allocation13 + $0x38] sm:$0xff] }
  0xe4   : > { %3789 = vmatpush3.bf16.msra.mxu0 %v5154_v48  ;;  %v724_v45 = vld [vmem:[#allocation13 + $0x50] sm:$0xff]  ;;  %v5212_v51 = vpack.c.bf16 %v717_v38, %v714_v36  ;;  %v5214_v52 = vpack.c.bf16 %v719_v42, %v716_v41  ;;  %v723_v59 = vld [vmem:[#allocation13 + $0x48] sm:$0xff]  ;;  %v722_v60 = vld [vmem:[#allocation13 + $0x40] sm:$0xff] }
  0xe5   : > { %3790 = vmatprep.subr.bf16.mxu0 %v4770_v4  ;;  %v720_v53 = vld [vmem:[#allocation13 + $0x30] sm:$0xff]  ;;  %v5216_v56 = vpack.c.bf16 %v724_v45, %v721_v44  ;;  %v725_v61 = vld [vmem:[#allocation13 + $0x58] sm:$0xff]  ;;  %v727_v62 = vld [vmem:[#allocation13 + $0x68] sm:$0xff] }
  0xe6   : > { %3754 = vmatpush1.bf16.msra.mxu1 %v5151_v46  ;;  %v730_v63 = vld [vmem:[#allocation13 + $0x80] sm:$0xff]  ;;  %v5220_v3 = vpack.c.bf16 %v723_v59, %v720_v53  ;;  %v5222_v6 = vpack.c.bf16 %v725_v61, %v722_v60  ;;  %v729_v13 = vld [vmem:[#allocation13 + $0x78] sm:$0xff]  ;;  %v728_v14 = vld [vmem:[#allocation13 + $0x70] sm:$0xff] }
  0xe7   : > { %3756 = vmatprep.subr.bf16.mxu1 %v5157_v49  ;;  %v726_v9 = vld [vmem:[#allocation13 + $0x60] sm:$0xff]  ;;  %v5226_v10 = vpack.c.bf16 %v730_v63, %v727_v62  ;;  %v731_v17 = vld [vmem:[#allocation13 + $0x88] sm:$0xff]  ;;  %v733_v19 = vld [vmem:[#allocation13 + $0x98] sm:$0xff] }
  0xe8   : > { %3792 = vmatpush3.bf16.msra.mxu0 %v5164_v57  ;;  %v736_v23 = vld [vmem:[#allocation13 + $0xb0] sm:$0xff]  ;;  %v5233_v24 = vpack.c.bf16 %v729_v13, %v726_v9  ;;  %v5235_v26 = vpack.c.bf16 %v731_v17, %v728_v14  ;;  %v735_v33 = vld [vmem:[#allocation13 + $0xa8] sm:$0xff]  ;;  %v734_v36 = vld [vmem:[#allocation13 + $0xa0] sm:$0xff] }
  0xe9   : > { %3793 = vmatprep.subr.bf16.mxu0 %v4770_v4  ;;  %v732_v27 = vld [vmem:[#allocation13 + $0x90] sm:$0xff]  ;;  %v5239_v32 = vpack.c.bf16 %v736_v23, %v733_v19  ;;  %v737_v38 = vld [vmem:[#allocation13 + $0xb8] sm:$0xff]  ;;  %v739_v41 = vld [vmem:[#allocation13 + $0xc8] sm:$0xff] }
  0xea   : > { %3758 = vmatpush1.bf16.msra.mxu1 %v5161_v55  ;;  %v742_v42 = vld [vmem:[#allocation13 + $0xe0] sm:$0xff]  ;;  %v5245_v44 = vpack.c.bf16 %v737_v38, %v734_v36  ;;  %v740_v53 = vld [vmem:[#allocation13 + $0xd0] sm:$0xff]  ;;  %v745_v59 = vld [vmem:[#allocation13 + $0xf8] sm:$0xff] }
  0xeb   : > { %3760 = vmatprep.subr.bf16.mxu1 %v5167_v58  ;;  %v738_v45 = vld [vmem:[#allocation13 + $0xc0] sm:$0xff]  ;;  %v748_v60 = vld [vmem:[#allocation13 + $0x110] sm:$0xff]  ;;  %v747_v13 = vld [vmem:[#allocation13 + $0x108] sm:$0xff] }
  0xec   : > { %3795 = vmatpush3.bf16.msra.mxu0 %v5174_v1  ;;  %v744_v63 = vld [vmem:[#allocation13 + $0xf0] sm:$0xff]  ;;  %v5259_v9 = vpack.c.bf16 %v748_v60, %v745_v59  ;;  %v746_v14 = vld [vmem:[#allocation13 + $0x100] sm:$0xff]  ;;  %v749_v17 = vld [vmem:[#allocation13 + $0x118] sm:$0xff] }
  0xed   : > { %3796 = vmatprep.subr.bf16.mxu0 %v4770_v4  ;;  %v751_v19 = vld [vmem:[#allocation13 + $0x128] sm:$0xff]  ;;  %v754_v23 = vld [vmem:[#allocation13 + $0x140] sm:$0xff]  ;;  %v756_v60 = vld [vmem:[#allocation13 + $0x150] sm:$0xff] }
  0xee   : > { %3762 = vmatpush1.bf16.msra.mxu1 %v5171_v0  ;;  %v750_v36 = vld [vmem:[#allocation13 + $0x120] sm:$0xff]  ;;  %v5269_v38 = vpack.c.bf16 %v754_v23, %v751_v19 }
  0xef   : > { %3764 = vmatprep.subr.bf16.mxu1 %v5177_v2 }
  0xf0   : > { %3798 = vmatpush3.bf16.msra.mxu0 %v5198_v29 }
  0xf1   : > { %3831 = vmatprep.subr.bf16.mxu0 %v4770_v4 }
  0xf2   : > { %3766 = vmatpush1.bf16.msra.mxu1 %v5181_v11 }
  0xf3   : > { %3768 = vmatprep.subr.bf16.mxu1 %v5185_v12 }
  0xf6   : > { %3770 = vmatpush1.bf16.msra.mxu1 %v5189_v16 }
  0xf7   : > { %3772 = vmatprep.subr.bf16.mxu1 %v5193_v22 }
  0xfa   : > { %3774 = vmatpush1.bf16.msra.mxu1 %v5195_v25 }
  0xfb   : > { %3800 = vmatprep.subr.bf16.mxu1 %v5202_v34 }
 0x1b0   : > { %v520_v43 = vpop.f32.mrb[0].mxu1 }
 0x1b1   : > { %v521_v47 = vadd.f32 %v5209_v35, %v520_v43  ;;  %v3268_v50 = vpop.f32.mrb[1].mxu1  ;;  %v5243_v43 = vpack.c.bf16 %v735_v33, %v732_v27  ;;  %v5263_v27 = vpack.c.bf16 %v747_v13, %v744_v63  ;;  %v5265_v33 = vpack.c.bf16 %v749_v17, %v746_v14  ;;  %v759_v13 = vld [vmem:[#allocation13 + $0x168] sm:$0xff]  ;;  %v758_v14 = vld [vmem:[#allocation13 + $0x160] sm:$0xff]  ;;  %v761_v17 = vld [vmem:[#allocation13 + $0x178] sm:$0xff] }
 0x1b2   : > { %v741_v50 = vld [vmem:[#allocation13 + $0xd8] sm:$0xff]  ;;  %v5283_v19 = vpack.c.bf16 %v759_v13, %v756_v60  ;;  %v5285_v23 = vpack.c.bf16 %v761_v17, %v758_v14  ;;  %v5361_v14 = vld [vmem:[%s5941_s6 + $0x1] ss:$0 sm:$0xff] }
 0x1b3   : > { %v524_v54 = vmax.f32 %v521_v47, 0.0  ;;  %v5249_v47 = vpack.c.bf16 %v742_v42, %v739_v41  ;;  %v5253_v61 = vpack.c.bf16 %v741_v50, %v738_v45  ;;  %v753_v41 = vld [vmem:[#allocation13 + $0x138] sm:$0xff]  ;;  %v752_v42 = vld [vmem:[#allocation13 + $0x130] sm:$0xff]  ;;  %v755_v45 = vld [vmem:[#allocation13 + $0x148] sm:$0xff] }
 0x1b4   : > { %v757_v50 = vld [vmem:[#allocation13 + $0x158] sm:$0xff]  ;;  %v5275_v59 = vpack.c.bf16 %v755_v45, %v752_v42  ;;  %v958_v45 = vld [vmem:[#allocation14 + $0x70] sm:$0xff] }
 0x1b5   : > { %638 = vmatmul.mubr.f32.vlgmr.msra.gmra.mrb[2].mxu1 %v524_v54  ;;  %3302 = vmatmul.mubr.f32.vlgmr.msra.gmra.mrb[0].mxu0 %v524_v54  ;;  %v743_v54 = vld [vmem:[#allocation13 + $0xe8] sm:$0xff] }
 0x1b6   : > { %3802 = vmatpush1.bf16.msra.mxu1 %v5212_v51  ;;  %3833 = vmatpush3.bf16.msra.mxu0 %v5214_v52  ;;  %v5255_v62 = vpack.c.bf16 %v743_v54, %v740_v53  ;;  %v760_v53 = vld [vmem:[#allocation13 + $0x170] sm:$0xff]  ;;  %v5273_v54 = vpack.c.bf16 %v753_v41, %v750_v36  ;;  %v5291_v36 = vld [vmem:[#allocation2] sm:$0xff] }
 0x1b7   : > { %3804 = vmatprep.subr.bf16.mxu1 %v5216_v56  ;;  %3834 = vmatprep.subr.bf16.mxu0 %v4770_v4  ;;  %v5279_v63 = vpack.c.bf16 %v760_v53, %v757_v50  ;;  %v2994_v41 = vld [vmem:[%s5081_s28 + $0x8] sm:$0xff]  ;;  %v959_v50 = vld [vmem:[#allocation14 + $0x78] sm:$0xff] }
 0x1b8   : > { %826 = vmatprep.mubr.f32.mxu1 %v5953_v7  ;;  %3336 = vmatprep.mubr.msk.f32.mxu0 %vm4771_vm0, %v5953_v7  ;;  %v5354_v53 = vpack.c.bf16 %v959_v50, %v958_v45  ;;  %v5382_v45 = vld [vmem:[%s5941_s6 + $0x4] ss:$0 sm:$0xff] }
 0x1ba   : > { %3806 = vmatpush1.bf16.msra.mxu1 %v5220_v3  ;;  %3836 = vmatpush3.bf16.msra.mxu0 %v5222_v6 }
 0x1bb   : > { %3808 = vmatprep.subr.bf16.mxu1 %v5226_v10  ;;  %3837 = vmatprep.subr.bf16.mxu0 %v4770_v4 }
 0x1be   : > { %3810 = vmatpush1.bf16.msra.mxu1 %v5233_v24  ;;  %3839 = vmatpush3.bf16.msra.mxu0 %v5235_v26 }
 0x1bf   : > { %3812 = vmatprep.subr.bf16.mxu1 %v5239_v32  ;;  %3840 = vmatprep.subr.bf16.mxu0 %v4770_v4 }
 0x1c2   : > { %3814 = vmatpush1.bf16.msra.mxu1 %v5243_v43  ;;  %3842 = vmatpush3.bf16.msra.mxu0 %v5245_v44 }
 0x1c3   : > { %3816 = vmatprep.subr.bf16.mxu1 %v5249_v47  ;;  %3843 = vmatprep.subr.bf16.mxu0 %v4770_v4 }
 0x1c6   : > { %3818 = vmatpush1.bf16.msra.mxu1 %v5253_v61  ;;  %3845 = vmatpush3.bf16.msra.mxu0 %v5255_v62 }
 0x1c7   : > { %3820 = vmatprep.subr.bf16.mxu1 %v5259_v9  ;;  %3846 = vmatprep.subr.bf16.mxu0 %v4770_v4 }
 0x1ca   : > { %3822 = vmatpush1.bf16.msra.mxu1 %v5263_v27  ;;  %3848 = vmatpush3.bf16.msra.mxu0 %v5265_v33 }
 0x1cb   : > { %3824 = vmatprep.subr.bf16.mxu1 %v5269_v38  ;;  %3849 = vmatprep.subr.bf16.mxu0 %v4770_v4 }
 0x1ce   : > { %3826 = vmatpush1.bf16.msra.mxu1 %v5273_v54  ;;  %3851 = vmatpush3.bf16.msra.mxu0 %v5275_v59 }
 0x1cf   : > { %3828 = vmatprep.subr.bf16.mxu1 %v5279_v63  ;;  %3852 = vmatprep.subr.bf16.mxu0 %v4770_v4 }
 0x1d2   : > { %3830 = vmatpush1.bf16.msra.mxu1 %v5283_v19  ;;  %3854 = vmatpush3.bf16.msra.mxu0 %v5285_v23 }
 0x1d3   : > { %3879 = vmatprep.subr.bf16.mxu0 %v4770_v4  ;;  %3855 = vmatprep.subr.bf16.mxu1 %v4770_v4 }
 0x1d5   : > { %827 = vmatmul.mubr.f32.vlgmr.msra.gmra.mrb[2].mxu1 %v5291_v36  ;;  %3337 = vmatmul.mubr.f32.vlgmr.msra.gmra.mrb[2].mxu0 %v5291_v36 }
 0x1d6   : > { %3881 = vmatpush3.bf16.msra.mxu0 %v5104_v5  ;;  %3386 = vmatprep.mubr.msk.f32.mxu0 %vm4771_vm0, %v5953_v7  ;;  %v944_v5 = vld [vmem:[#allocation14] sm:$0xff] }
 0x1d7   : > { %3882 = vmatprep.subr.bf16.mxu0 %v4770_v4  ;;  %3371 = vmatprep.mubr.msk.f32.mxu1 %vm4771_vm0, %v5953_v7 }
 0x1da   : > { %3884 = vmatpush3.bf16.msra.mxu0 %v5112_v8  ;;  %v945_v8 = vld [vmem:[#allocation14 + $0x8] sm:$0xff] }
 0x1db   : > { %3885 = vmatprep.subr.bf16.mxu0 %v4770_v4 }
 0x1de   : > { %3887 = vmatpush3.bf16.msra.mxu0 %v5118_v18  ;;  %v5326_v18 = vpack.c.bf16 %v945_v8, %v944_v5  ;;  %v5367_v8 = vld [vmem:[%s5941_s6 + $0x2] ss:$0 sm:$0xff] }
 0x1df   : > { %3889 = vmatprep.subr.bf16.mxu0 %v5124_v21  ;;  %v946_v21 = vld [vmem:[#allocation14 + $0x10] sm:$0xff] }
 0x1e0   : > { %3857 = vmatpush3.bf16.msra.mxu1 %v5326_v18 }
 0x1e1   : > { %3387 = vmatmul.mubr.msk.f32.vlgmr.msra.gmra.mrb[4].mxu0 %vm450_vm1, %v2994_v41  ;;  %3858 = vmatprep.subr.bf16.mxu1 %v4770_v4 }
 0x1e2   : > { %3891 = vmatpush1.bf16.msra.mxu0 %v5129_v28  ;;  %1237 = vmatprep.mubr.f32.mxu0 %v5953_v7  ;;  %v947_v28 = vld [vmem:[#allocation14 + $0x18] sm:$0xff] }
 0x1e3   : > { %3893 = vmatprep.subr.bf16.mxu0 %v5135_v31  ;;  %v5330_v31 = vpack.c.bf16 %v947_v28, %v946_v21 }
 0x1e5   : > { %3860 = vmatpush3.bf16.msra.mxu1 %v5330_v31 }
 0x1e6   : > { %3895 = vmatpush1.bf16.msra.mxu0 %v5140_v37  ;;  %3861 = vmatprep.subr.bf16.mxu1 %v4770_v4  ;;  %v948_v37 = vld [vmem:[#allocation14 + $0x20] sm:$0xff] }
 0x1e7   : > { %3897 = vmatprep.subr.bf16.mxu0 %v5146_v40  ;;  %v949_v40 = vld [vmem:[#allocation14 + $0x28] sm:$0xff] }
 0x1ea   : > { %3899 = vmatpush1.bf16.msra.mxu0 %v5151_v46  ;;  %v5334_v46 = vpack.c.bf16 %v949_v40, %v948_v37 }
 0x1eb   : > { %3901 = vmatprep.subr.bf16.mxu0 %v5157_v49  ;;  %v950_v49 = vld [vmem:[#allocation14 + $0x30] sm:$0xff] }
 0x1ec   : > { %3863 = vmatpush3.bf16.msra.mxu1 %v5334_v46 }
 0x1ed   : > { %3864 = vmatprep.subr.bf16.mxu1 %v4770_v4 }
 0x1ee   : > { %3903 = vmatpush1.bf16.msra.mxu0 %v5161_v55  ;;  %v951_v55 = vld [vmem:[#allocation14 + $0x38] sm:$0xff] }
 0x1ef   : > { %3905 = vmatprep.subr.bf16.mxu0 %v5167_v58  ;;  %v5338_v58 = vpack.c.bf16 %v951_v55, %v950_v49 }
 0x1f1   : > { %3866 = vmatpush3.bf16.msra.mxu1 %v5338_v58 }
 0x1f2   : > { %3907 = vmatpush1.bf16.msra.mxu0 %v5171_v0  ;;  %3867 = vmatprep.subr.bf16.mxu1 %v4770_v4  ;;  %v952_v0 = vld [vmem:[#allocation14 + $0x40] sm:$0xff] }
 0x1f3   : > { %3909 = vmatprep.subr.bf16.mxu0 %v5177_v2  ;;  %v953_v2 = vld [vmem:[#allocation14 + $0x48] sm:$0xff] }
 0x1f6   : > { %3911 = vmatpush1.bf16.msra.mxu0 %v5181_v11  ;;  %v5342_v11 = vpack.c.bf16 %v953_v2, %v952_v0 }
 0x1f7   : > { %3913 = vmatprep.subr.bf16.mxu0 %v5185_v12  ;;  %v954_v12 = vld [vmem:[#allocation14 + $0x50] sm:$0xff] }
 0x1f8   : > { %3869 = vmatpush3.bf16.msra.mxu1 %v5342_v11 }
 0x1f9   : > { %3870 = vmatprep.subr.bf16.mxu1 %v4770_v4 }
 0x1fa   : > { %3915 = vmatpush1.bf16.msra.mxu0 %v5189_v16  ;;  %v955_v16 = vld [vmem:[#allocation14 + $0x58] sm:$0xff] }
 0x1fb   : > { %3917 = vmatprep.subr.bf16.mxu0 %v5193_v22  ;;  %v5346_v22 = vpack.c.bf16 %v955_v16, %v954_v12 }
 0x1fd   : > { %3872 = vmatpush3.bf16.msra.mxu1 %v5346_v22 }
 0x1fe   : > { %3919 = vmatpush1.bf16.msra.mxu0 %v5195_v25  ;;  %3873 = vmatprep.subr.bf16.mxu1 %v4770_v4  ;;  %v956_v25 = vld [vmem:[#allocation14 + $0x60] sm:$0xff] }
 0x1ff   : > { %3945 = vmatprep.subr.bf16.mxu0 %v5202_v34  ;;  %v957_v34 = vld [vmem:[#allocation14 + $0x68] sm:$0xff] }
 0x200   : > { %v5350_v42 = vpack.c.bf16 %v957_v34, %v956_v25 }
 0x202   : > { %3875 = vmatpush3.bf16.msra.mxu1 %v5350_v42 }
 0x203   : > { %3876 = vmatprep.subr.bf16.mxu1 %v4770_v4 }
 0x206   : > { %3878 = vmatpush3.bf16.msra.mxu1 %v5354_v53 }
 0x207   : > { %3920 = vmatprep.subr.bf16.mxu1 %v4770_v4 }
 0x288   : > { %v710_v60 = vpop.f32.mrb[0].mxu0 }
 0x289   : > { %v3303_v13 = vpop.f32.mrb[1].mxu0 }
 0x2a8   : > { %v828_v17 = vpop.f32.mrb[2].mxu1  ;;  %v899_v41 = vpop.f32.mrb[2].mxu0 }
 0x2a9   : > { %v908_v5 = vadd.f32 %v5361_v14, %v828_v17  ;;  %v830_v21 = vpop.f32.mrb[3].mxu1  ;;  %v3338_v28 = vpop.f32.mrb[3].mxu0  ;;  %v936_v13 = vadd.f32 %v5382_v45, %v899_v41 }
 0x2aa   : > { %v920_v40 = vadd.f32 %v5367_v8, %v830_v21  ;;  %v1729_v21 = vld [vmem:[#allocation11 + $0x90] sm:$0xff]  ;;  %v1732_v28 = vld [vmem:[#allocation11 + $0xa8] sm:$0xff] }
 0x2ab   : > { %v2988_v37 = vmul.f32 -1.442695, %v908_v5 }
 0x2ac   : > { %v2990_v49 = vmul.f32 -1.442695, %v920_v40  ;;  %v1736_v40 = vld [vmem:[#allocation11 + $0xc8] sm:$0xff] }
 0x2ad   : > { %4435 = vpow2.f32 %v2988_v37  ;;  %v5510_v37 = vpack.c.bf16 %v1732_v28, %v1729_v21 }
 0x2ae   : > { %4437 = vpow2.f32 %v2990_v49  ;;  %v1739_v49 = vld [vmem:[#allocation11 + $0xe0] sm:$0xff] }
 0x2b4   : > { %v1120_v55 = vpop.f32.mrb[4].mxu0 }
 0x2b5   : > { %v5371_v0 = vadd.f32 %v5209_v35, %v1120_v55  ;;  %v3388_v2 = vpop.f32.mrb[5].mxu0  ;;  %v5514_v55 = vpack.c.bf16 %v1739_v49, %v1736_v40 }
 0x2b6   : > { %v1738_v2 = vld [vmem:[#allocation11 + $0xd8] sm:$0xff] }
 0x2b7   : > { %v4436_v12 = vpop.eup %4435  ;;  %v1124_v16 = vmax.f32 %v5371_v0, 0.0  ;;  %v1735_v0 = vld [vmem:[#allocation11 + $0xc0] sm:$0xff] }
 0x2b8   : > { %v912_v25 = vadd.f32 1.0, %v4436_v12  ;;  %v4438_v34 = vpop.eup %4437  ;;  %v5516_v12 = vpack.c.bf16 %v1738_v2, %v1735_v0 }
 0x2b9   : > { %1238 = vmatmul.mubr.f32.vlgmr.msra.gmra.mrb[6].mxu0 %v1124_v16  ;;  %v924_v50 = vadd.f32 1.0, %v4438_v34 }
 0x2ba   : > { %4439 = vrcp.f32 %v912_v25  ;;  %3947 = vmatpush1.bf16.msra.mxu0 %v5212_v51  ;;  %1426 = vmatprep.mubr.f32.mxu0 %v5953_v7  ;;  %v5390_v51 = vld [vmem:[%s5941_s6 + $0x3] ss:$0 sm:$0xff]  ;;  %v1745_v25 = vld [vmem:[#allocation11 + $0x110] sm:$0xff] }
 0x2bb   : > { %3949 = vmatprep.subr.bf16.mxu0 %v5216_v56  ;;  %4441 = vrcp.f32 %v924_v50  ;;  %v1741_v50 = vld [vmem:[#allocation11 + $0xf0] sm:$0xff] }
 0x2be   : > { %3951 = vmatpush1.bf16.msra.mxu0 %v5220_v3  ;;  %v931_v3 = vadd.f32 %v5390_v51, %v710_v60 }
 0x2bf   : > { %3953 = vmatprep.subr.bf16.mxu0 %v5226_v10 }
 0x2c2   : > { %3955 = vmatpush1.bf16.msra.mxu0 %v5233_v24 }
 0x2c3   : > { %3957 = vmatprep.subr.bf16.mxu0 %v5239_v32 }
 0x2c4   : > { %v4440_v56 = vpop.eup %4439 }
 0x2c5   : > { %v937_v10 = vmul.f32 %v4440_v56, %v936_v13  ;;  %v4442_v24 = vpop.eup %4441  ;;  %v1744_v13 = vld [vmem:[#allocation11 + $0x108] sm:$0xff] }
 0x2c6   : > { %3959 = vmatpush1.bf16.msra.mxu0 %v5243_v43  ;;  %v940_v32 = vsub.f32 1.0, %v4442_v24  ;;  %v1040_v43 = vstv %s1039_s25  ;;  %v942_v41 = vmul.f32 %v4442_v24, %v5291_v36  ;;  %v5522_v56 = vpack.c.bf16 %v1744_v13, %v1741_v50  ;;  %v1747_v24 = vld [vmem:[#allocation11 + $0x120] sm:$0xff]  ;;  %v1903_v50 = vld [vmem:[#allocation13 + $0x18] sm:$0xff] }
 0x2c7   : > { %v938_v17 = vadd.f32 %v937_v10, %v931_v3  ;;  %3961 = vmatprep.subr.bf16.mxu0 %v5249_v47  ;;  %vm1041_vm2 = vcmp.eq.s32.totalorder %v1040_v43, 1  ;;  %v1748_v3 = vld [vmem:[#allocation11 + $0x128] sm:$0xff]  ;;  %v1751_v10 = vld [vmem:[#allocation11 + $0x140] sm:$0xff] }
 0x2c9   : > { %4443 = vtanh.f32 %v938_v17  ;;  %v5526_v17 = vpack.c.bf16 %v1751_v10, %v1748_v3  ;;  %v1907_v3 = vld [vmem:[#allocation13 + $0x38] sm:$0xff]  ;;  %v1910_v10 = vld [vmem:[#allocation13 + $0x50] sm:$0xff] }
 0x2ca   : > { %3963 = vmatpush1.bf16.msra.mxu0 %v5253_v61 }
 0x2cb   : > { %3965 = vmatprep.subr.bf16.mxu0 %v5259_v9 }
 0x2ce   : > { %3967 = vmatpush1.bf16.msra.mxu0 %v5263_v27 }
 0x2cf   : > { %3969 = vmatprep.subr.bf16.mxu0 %v5269_v38  ;;  %v1718_v38 = vld [vmem:[#allocation11 + $0x38] sm:$0xff] }
 0x2d2   : > { %3971 = vmatpush1.bf16.msra.mxu0 %v5273_v54  ;;  %v1721_v54 = vld [vmem:[#allocation11 + $0x50] sm:$0xff] }
 0x2d3   : > { %v4444_v47 = vpop.eup %4443  ;;  %3973 = vmatprep.subr.bf16.mxu0 %v5279_v63  ;;  %v5494_v63 = vpack.c.bf16 %v1721_v54, %v1718_v38 }
 0x2d4   : > { %v941_v60 = vmul.f32 %v4444_v47, %v940_v32  ;;  %v1750_v32 = vld [vmem:[#allocation11 + $0x138] sm:$0xff] }
 0x2d5   : > { %v5528_v43 = vpack.c.bf16 %v1750_v32, %v1747_v24  ;;  %v1754_v47 = vld [vmem:[#allocation11 + $0x158] sm:$0xff] }
 0x2d6   : > { %3975 = vmatpush1.bf16.msra.mxu0 %v5283_v19  ;;  %v943_v61 = vadd.f32 %v942_v41, %v941_v60  ;;  %v1717_v19 = vld [vmem:[#allocation11 + $0x30] sm:$0xff] }
 0x2d7   : > { %4000 = vmatprep.subr.bf16.mxu0 %v4770_v4  ;;  %v1757_v60 = vld [vmem:[#allocation11 + $0x170] sm:$0xff] }
 0x2d8   : > { %3372 = vmatmul.mubr.f32.vlgmr.msra.gmra.mrb[4].mxu1 %v943_v61  ;;  %v5414_v9 = vsel %vm1041_vm2, %v943_v61, %v5291_v36  ;;  %v1724_v36 = vld [vmem:[#allocation11 + $0x68] sm:$0xff]  ;;  %v5532_v41 = vpack.c.bf16 %v1757_v60, %v1754_v47  ;;  %v1753_v61 = vld [vmem:[#allocation11 + $0x150] sm:$0xff] }
 0x2d9   : > { %3922 = vmatpush3.bf16.msra.mxu1 %v5115_v15  ;;  %1427 = vmatmul.mubr.f32.vlgmr.msra.gmra.mrb[6].mxu0 %v5414_v9  ;;  %v1631_v15 = vld [vmem:[#allocation10] sm:$0xff] }
 0x2da   : > { %3923 = vmatprep.subr.bf16.mxu1 %v4770_v4  ;;  %3421 = vmatprep.mubr.msk.f32.mxu1 %vm4771_vm0, %v5953_v7 }
 0x2db   : > { %4002 = vmatpush3.bf16.msra.mxu0 %v5326_v18  ;;  %3491 = vmatprep.mubr.msk.f32.mxu0 %vm4771_vm0, %v5953_v7  ;;  %v1727_v18 = vld [vmem:[#allocation11 + $0x80] sm:$0xff] }
 0x2dc   : > { %4003 = vmatprep.subr.bf16.mxu0 %v4770_v4 }
 0x2dd   : > { %3925 = vmatpush3.bf16.msra.mxu1 %v5121_v20  ;;  %v1632_v20 = vld [vmem:[#allocation10 + $0x8] sm:$0xff] }
 0x2de   : > { %3926 = vmatprep.subr.bf16.mxu1 %v4770_v4 }
 0x2df   : > { %4005 = vmatpush3.bf16.msra.mxu0 %v5330_v31 }
 0x2e0   : > { %4006 = vmatprep.subr.bf16.mxu0 %v4770_v4 }
 0x2e1   : > { %3928 = vmatpush3.bf16.msra.mxu1 %v5132_v30  ;;  %v5472_v30 = vpack.c.bf16 %v1632_v20, %v1631_v15  ;;  %v1756_v15 = vld [vmem:[#allocation11 + $0x168] sm:$0xff] }
 0x2e2   : > { %3929 = vmatprep.subr.bf16.mxu1 %v4770_v4  ;;  %v5534_v20 = vpack.c.bf16 %v1756_v15, %v1753_v61  ;;  %v5558_v15 = vpack.c.bf16 %v1910_v10, %v1907_v3  ;;  %v1928_v3 = vld [vmem:[#allocation13 + $0xe0] sm:$0xff] }
 0x2e3   : > { %4008 = vmatpush3.bf16.msra.mxu0 %v5334_v46  ;;  %v5501_v46 = vpack.c.bf16 %v1727_v18, %v1724_v36 }
 0x2e4   : > { %4009 = vmatprep.subr.bf16.mxu0 %v4770_v4 }
 0x2e5   : > { %3931 = vmatpush3.bf16.msra.mxu1 %v5143_v39  ;;  %v1633_v39 = vld [vmem:[#allocation10 + $0x10] sm:$0xff] }
 0x2e6   : > { %3932 = vmatprep.subr.bf16.mxu1 %v4770_v4 }
 0x2e7   : > { %4011 = vmatpush3.bf16.msra.mxu0 %v5338_v58  ;;  %v1723_v58 = vld [vmem:[#allocation11 + $0x60] sm:$0xff] }
 0x2e8   : > { %4012 = vmatprep.subr.bf16.mxu0 %v4770_v4 }
 0x2e9   : > { %3934 = vmatpush3.bf16.msra.mxu1 %v5154_v48  ;;  %v1634_v48 = vld [vmem:[#allocation10 + $0x18] sm:$0xff] }
 0x2ea   : > { %3935 = vmatprep.subr.bf16.mxu1 %v4770_v4 }
 0x2eb   : > { %4014 = vmatpush3.bf16.msra.mxu0 %v5342_v11  ;;  %v1726_v11 = vld [vmem:[#allocation11 + $0x78] sm:$0xff] }
 0x2ec   : > { %4015 = vmatprep.subr.bf16.mxu0 %v4770_v4 }
 0x2ed   : > { %3937 = vmatpush3.bf16.msra.mxu1 %v5164_v57  ;;  %v5477_v57 = vpack.c.bf16 %v1634_v48, %v1633_v39  ;;  %v1901_v39 = vld [vmem:[#allocation13 + $0x8] sm:$0xff]  ;;  %v1904_v48 = vld [vmem:[#allocation13 + $0x20] sm:$0xff] }
 0x2ee   : > { %3938 = vmatprep.subr.bf16.mxu1 %v4770_v4 }
 0x2ef   : > { %4017 = vmatpush3.bf16.msra.mxu0 %v5346_v22  ;;  %v1730_v22 = vld [vmem:[#allocation11 + $0x98] sm:$0xff] }
 0x2f0   : > { %4018 = vmatprep.subr.bf16.mxu0 %v4770_v4 }
 0x2f1   : > { %3940 = vmatpush3.bf16.msra.mxu1 %v5174_v1  ;;  %v1635_v1 = vld [vmem:[#allocation10 + $0x20] sm:$0xff] }
 0x2f2   : > { %3941 = vmatprep.subr.bf16.mxu1 %v4770_v4 }
 0x2f3   : > { %4020 = vmatpush3.bf16.msra.mxu0 %v5350_v42  ;;  %v1733_v42 = vld [vmem:[#allocation11 + $0xb0] sm:$0xff] }
 0x2f4   : > { %4021 = vmatprep.subr.bf16.mxu0 %v4770_v4  ;;  %v5507_v5 = vpack.c.bf16 %v1733_v42, %v1730_v22 }
 0x2f5   : > { %3943 = vmatpush3.bf16.msra.mxu1 %v5198_v29  ;;  %v1636_v29 = vld [vmem:[#allocation10 + $0x28] sm:$0xff] }
 0x2f6   : > { %3976 = vmatprep.subr.bf16.mxu1 %v4770_v4 }
 0x2f7   : > { %4023 = vmatpush3.bf16.msra.mxu0 %v5354_v53  ;;  %v5504_v53 = vpack.c.bf16 %v1726_v11, %v1723_v58 }
 0x2f8   : > { %3422 = vmatmul.mubr.f32.vlgmr.msra.gmra.mrb[6].mxu1 %v1124_v16  ;;  %4065 = vmatprep.subr.bf16.mxu0 %v4770_v4  ;;  %v1742_v16 = vld [vmem:[#allocation11 + $0xf8] sm:$0xff] }
 0x2f9   : > { %3978 = vmatpush3.bf16.msra.mxu1 %v5214_v52  ;;  %3456 = vmatprep.mubr.msk.f32.mxu1 %vm4771_vm0, %v5953_v7  ;;  %v5483_v52 = vpack.c.bf16 %v1636_v29, %v1635_v1  ;;  %v5520_v34 = vpack.c.bf16 %v1745_v25, %v1742_v16  ;;  %v5538_v1 = vpack.c.bf16 %v1904_v48, %v1901_v39  ;;  %v5544_v29 = vld [vmem:[%s5943_s8] ss:$0 sm:$0xff]  ;;  %v1906_v39 = vld [vmem:[#allocation13 + $0x30] sm:$0xff]  ;;  %v1909_v48 = vld [vmem:[#allocation13 + $0x48] sm:$0xff] }
 0x2fa   : > { %3979 = vmatprep.subr.bf16.mxu1 %v4770_v4  ;;  %v1900_v25 = vld [vmem:[#allocation13] sm:$0xff] }
 0x2fb   : > { %v5555_v60 = vpack.c.bf16 %v1903_v50, %v1900_v25  ;;  %v1725_v25 = vld [vmem:[#allocation11 + $0x70] sm:$0xff]  ;;  %v1728_v50 = vld [vmem:[#allocation11 + $0x88] sm:$0xff] }
 0x2fd   : > { %3981 = vmatpush3.bf16.msra.mxu1 %v5222_v6  ;;  %v3000_v6 = vld [vmem:[%s5081_s28 + $0x10] sm:$0xff] }
 0x2fe   : > { %3982 = vmatprep.subr.bf16.mxu1 %v4770_v4 }
 0x301   : > { %3984 = vmatpush3.bf16.msra.mxu1 %v5235_v26  ;;  %v1712_v26 = vld [vmem:[#allocation11 + $0x8] sm:$0xff] }
 0x302   : > { %3985 = vmatprep.subr.bf16.mxu1 %v4770_v4 }
 0x305   : > { %3987 = vmatpush3.bf16.msra.mxu1 %v5245_v44  ;;  %v1715_v44 = vld [vmem:[#allocation11 + $0x20] sm:$0xff] }
 0x306   : > { %3988 = vmatprep.subr.bf16.mxu1 %v4770_v4  ;;  %v5490_v27 = vpack.c.bf16 %v1715_v44, %v1712_v26 }
 0x309   : > { %3990 = vmatpush3.bf16.msra.mxu1 %v5255_v62  ;;  %v1711_v62 = vld [vmem:[#allocation11] sm:$0xff] }
 0x30a   : > { %3991 = vmatprep.subr.bf16.mxu1 %v4770_v4 }
 0x30d   : > { %3993 = vmatpush3.bf16.msra.mxu1 %v5265_v33  ;;  %v1714_v33 = vld [vmem:[#allocation11 + $0x18] sm:$0xff] }
 0x30e   : > { %3994 = vmatprep.subr.bf16.mxu1 %v4770_v4 }
 0x311   : > { %3996 = vmatpush3.bf16.msra.mxu1 %v5275_v59  ;;  %v5492_v59 = vpack.c.bf16 %v1714_v33, %v1711_v62 }
 0x312   : > { %3997 = vmatprep.subr.bf16.mxu1 %v4770_v4 }
 0x315   : > { %3999 = vmatpush3.bf16.msra.mxu1 %v5285_v23  ;;  %v1720_v23 = vld [vmem:[#allocation11 + $0x48] sm:$0xff] }
 0x316   : > { %4024 = vmatprep.subr.bf16.mxu1 %v4770_v4  ;;  %v5498_v31 = vpack.c.bf16 %v1720_v23, %v1717_v19 }
 0x318   : > { %3457 = vmatmul.mubr.f32.vlgmr.msra.gmra.mrb[8].mxu1 %v5414_v9 }
 0x319   : > { %4026 = vmatpush3.bf16.msra.mxu1 %v5472_v30  ;;  %3506 = vmatprep.mubr.msk.f32.mxu1 %vm4771_vm0, %v5953_v7 }
 0x31a   : > { %4027 = vmatprep.subr.bf16.mxu1 %v4770_v4 }
 0x31d   : > { %4029 = vmatpush3.bf16.msra.mxu1 %v5477_v57 }
 0x31e   : > { %4030 = vmatprep.subr.bf16.mxu1 %v4770_v4 }
 0x321   : > { %4032 = vmatpush3.bf16.msra.mxu1 %v5483_v52 }
 0x322   : > { %4034 = vmatprep.subr.bf16.mxu1 %v5490_v27 }
 0x324   : > { %3507 = vmatmul.mubr.msk.f32.vlgmr.msra.gmra.mrb[10].mxu1 %vm450_vm1, %v3000_v6 }
 0x325   : > { %1823 = vmatprep.mubr.f32.mxu1 %v5953_v7  ;;  %4036 = vmatpush1.bf16.msra.mxu1 %v5492_v59 }
 0x326   : > { %4038 = vmatprep.subr.bf16.mxu1 %v5494_v63 }
 0x329   : > { %4040 = vmatpush1.bf16.msra.mxu1 %v5498_v31 }
 0x32a   : > { %4042 = vmatprep.subr.bf16.mxu1 %v5501_v46 }
 0x32d   : > { %4044 = vmatpush1.bf16.msra.mxu1 %v5504_v53 }
 0x32e   : > { %4046 = vmatprep.subr.bf16.mxu1 %v5507_v5 }
 0x331   : > { %4048 = vmatpush1.bf16.msra.mxu1 %v5510_v37 }
 0x332   : > { %4050 = vmatprep.subr.bf16.mxu1 %v5514_v55 }
 0x335   : > { %4052 = vmatpush1.bf16.msra.mxu1 %v5516_v12 }
 0x336   : > { %4054 = vmatprep.subr.bf16.mxu1 %v5520_v34 }
 0x339   : > { %4056 = vmatpush1.bf16.msra.mxu1 %v5522_v56 }
 0x33a   : > { %4058 = vmatprep.subr.bf16.mxu1 %v5526_v17 }
 0x33d   : > { %4060 = vmatpush1.bf16.msra.mxu1 %v5528_v43 }
 0x33e   : > { %4062 = vmatprep.subr.bf16.mxu1 %v5532_v41 }
 0x341   : > { %4064 = vmatpush1.bf16.msra.mxu1 %v5534_v20 }
 0x342   : > { %4090 = vmatprep.subr.bf16.mxu1 %v5538_v1 }
 0x3ab   : > { %v1033_v6 = vpop.f32.mrb[4].mxu1 }
 0x3ac   : > { %v1034_v26 = vadd.f32 %v5544_v29, %v1033_v6  ;;  %v3373_v44 = vpop.f32.mrb[5].mxu1  ;;  %v1428_v62 = vpop.f32.mrb[6].mxu0  ;;  %v1713_v6 = vld [vmem:[#allocation11 + $0x10] sm:$0xff] }
 0x3ad   : > { %v1430_v33 = vpop.f32.mrb[7].mxu0  ;;  %v1504_v38 = vadd.f32 %v5361_v14, %v1428_v62  ;;  %v1716_v44 = vld [vmem:[#allocation11 + $0x28] sm:$0xff] }
 0x3ae   : > { %1037 = vst [vmem:[%s5099_s21] sm:$0xff] %v1034_v26  ;;  %v1512_v36 = vadd.f32 %v5367_v8, %v1430_v33  ;;  %v1913_v62 = vld [vmem:[#allocation13 + $0x68] sm:$0xff]  ;;  %v1916_v33 = vld [vmem:[#allocation13 + $0x80] sm:$0xff] }
 0x3af   : > { %v2996_v23 = vmul.f32 -1.442695, %v1504_v38 }
 0x3b0   : > { %v2997_v18 = vmul.f32 -1.442695, %v1512_v36  ;;  %v5570_v36 = vpack.c.bf16 %v1916_v33, %v1913_v62  ;;  %v1934_v62 = vld [vmem:[#allocation13 + $0x110] sm:$0xff] }
 0x3b1   : > { %4445 = vpow2.f32 %v2996_v23  ;;  %v5568_v23 = vpack.c.bf16 %v1716_v44, %v1713_v6  ;;  %v1731_v6 = vld [vmem:[#allocation11 + $0xa0] sm:$0xff]  ;;  %v1931_v44 = vld [vmem:[#allocation13 + $0xf8] sm:$0xff] }
 0x3b2   : > { %4447 = vpow2.f32 %v2997_v18  ;;  %v1912_v18 = vld [vmem:[#allocation13 + $0x60] sm:$0xff] }
 0x3bb   : > { %v4446_v58 = vpop.eup %4445 }
 0x3bc   : > { %v1508_v11 = vadd.f32 1.0, %v4446_v58  ;;  %v4448_v22 = vpop.eup %4447  ;;  %v1915_v58 = vld [vmem:[#allocation13 + $0x78] sm:$0xff] }
 0x3bd   : > { %v1516_v42 = vadd.f32 1.0, %v4448_v22 }
 0x3be   : > { %4449 = vrcp.f32 %v1508_v11  ;;  %v1719_v11 = vld [vmem:[#allocation11 + $0x40] sm:$0xff] }
 0x3bf   : > { %4451 = vrcp.f32 %v1516_v42  ;;  %v1722_v42 = vld [vmem:[#allocation11 + $0x58] sm:$0xff] }
 0x3c8   : > { %v4450_v49 = vpop.eup %4449 }
 0x3c9   : > { %v4452_v24 = vpop.eup %4451 }
 0x3ca   : > { %v1524_v26 = vsub.f32 1.0, %v4452_v24 }
 0x3cb   : > { %v1310_v54 = vpop.f32.mrb[6].mxu1 }
 0x3cc   : > { %v3423_v19 = vpop.f32.mrb[7].mxu1  ;;  %v1519_v0 = vadd.f32 %v5390_v51, %v1310_v54 }
 0x3cd   : > { %v1526_v19 = vmul.f32 %v4452_v24, %v5414_v9  ;;  %v5592_v24 = vpack.c.bf16 %v1728_v50, %v1725_v25  ;;  %v1936_v25 = vld [vmem:[#allocation13 + $0x120] sm:$0xff]  ;;  %v1939_v50 = vld [vmem:[#allocation13 + $0x138] sm:$0xff] }
 0x3eb   : > { %v1499_v21 = vpop.f32.mrb[8].mxu1 }
 0x3ec   : > { %v1520_v28 = vadd.f32 %v5382_v45, %v1499_v21  ;;  %v3458_v40 = vpop.f32.mrb[9].mxu1  ;;  %v1919_v21 = vld [vmem:[#allocation13 + $0x98] sm:$0xff] }
 0x3ed   : > { %v5576_v40 = vpack.c.bf16 %v1915_v58, %v1912_v18  ;;  %v1933_v18 = vld [vmem:[#allocation13 + $0x108] sm:$0xff]  ;;  %v1737_v58 = vld [vmem:[#allocation11 + $0xd0] sm:$0xff] }
 0x3ee   : > { %v1521_v2 = vmul.f32 %v4450_v49, %v1520_v28  ;;  %v1922_v28 = vld [vmem:[#allocation13 + $0xb0] sm:$0xff]  ;;  %v5580_v49 = vpack.c.bf16 %v1722_v42, %v1719_v11  ;;  %v1740_v11 = vld [vmem:[#allocation11 + $0xe8] sm:$0xff] }
 0x3ef   : > { %v1937_v42 = vld [vmem:[#allocation13 + $0x128] sm:$0xff] }
 0x3f0   : > { %v1522_v16 = vadd.f32 %v1521_v2, %v1519_v0  ;;  %v5582_v0 = vpack.c.bf16 %v1922_v28, %v1919_v21  ;;  %v1918_v2 = vld [vmem:[#allocation13 + $0x90] sm:$0xff]  ;;  %v1940_v21 = vld [vmem:[#allocation13 + $0x140] sm:$0xff] }
 0x3f2   : > { %4453 = vtanh.f32 %v1522_v16  ;;  %v1921_v16 = vld [vmem:[#allocation13 + $0xa8] sm:$0xff] }
 0x3f3   : > { %v5588_v10 = vpack.c.bf16 %v1921_v16, %v1918_v2  ;;  %v5618_v2 = vpack.c.bf16 %v1740_v11, %v1737_v58  ;;  %v5620_v16 = vpack.c.bf16 %v1940_v21, %v1937_v42  ;;  %v1752_v58 = vld [vmem:[#allocation11 + $0x148] sm:$0xff]  ;;  %v1626_v42 = vstv %s1625_s24 }
 0x3f4   : > { %vm1627_vm3 = vcmp.eq.s32.totalorder %v1626_v42, 1 }
 0x3f7   : > { %v1706_v13 = vpop.f32.mrb[10].mxu1 }
 0x3f8   : > { %v5553_v32 = vadd.f32 %v5209_v35, %v1706_v13  ;;  %v3508_v47 = vpop.f32.mrb[11].mxu1  ;;  %v5563_v35 = vpack.c.bf16 %v1909_v48, %v1906_v39  ;;  %v1925_v13 = vld [vmem:[#allocation13 + $0xc8] sm:$0xff]  ;;  %v1924_v39 = vld [vmem:[#allocation13 + $0xc0] sm:$0xff]  ;;  %v1927_v48 = vld [vmem:[#allocation13 + $0xd8] sm:$0xff] }
 0x3f9   : > { %v5594_v47 = vpack.c.bf16 %v1928_v3, %v1925_v13  ;;  %v5598_v33 = vpack.c.bf16 %v1927_v48, %v1924_v39  ;;  %v1743_v13 = vld [vmem:[#allocation11 + $0x100] sm:$0xff]  ;;  %v1746_v3 = vld [vmem:[#allocation11 + $0x118] sm:$0xff]  ;;  %v1946_v48 = vld [vmem:[#allocation13 + $0x170] sm:$0xff] }
 0x3fa   : > { %v1710_v61 = vmax.f32 %v5553_v32, 0.0  ;;  %v1943_v39 = vld [vmem:[#allocation13 + $0x158] sm:$0xff] }
 0x3fb   : > { %v1923_v32 = vld [vmem:[#allocation13 + $0xb8] sm:$0xff] }
 0x3fc   : > { %v4454_v38 = vpop.eup %4453  ;;  %1824 = vmatmul.mubr.f32.vlgmr.msra.gmra.mrb[12].mxu1 %v1710_v61 }
 0x3fd   : > { %4092 = vmatpush1.bf16.msra.mxu1 %v5555_v60  ;;  %v1525_v54 = vmul.f32 %v4454_v38, %v1524_v26  ;;  %2012 = vmatprep.mubr.f32.mxu1 %v5953_v7  ;;  %v1734_v26 = vld [vmem:[#allocation11 + $0xb8] sm:$0xff] }
 0x3fe   : > { %4094 = vmatprep.subr.bf16.mxu1 %v5558_v15  ;;  %v5602_v38 = vpack.c.bf16 %v1734_v26, %v1731_v6  ;;  %v5624_v6 = vpack.c.bf16 %v1939_v50, %v1936_v25  ;;  %v5630_v26 = vpack.c.bf16 %v1746_v3, %v1743_v13  ;;  %v1755_v25 = vld [vmem:[#allocation11 + $0x160] sm:$0xff]  ;;  %v1758_v50 = vld [vmem:[#allocation11 + $0x178] sm:$0xff] }
 0x3ff   : > { %v5572_v22 = vadd.f32 %v1526_v19, %v1525_v54  ;;  %v5604_v54 = vpack.c.bf16 %v1934_v62, %v1931_v44  ;;  %v1930_v19 = vld [vmem:[#allocation13 + $0xf0] sm:$0xff]  ;;  %v5632_v44 = vpack.c.bf16 %v1946_v48, %v1943_v39  ;;  %v5645_v13 = vpack.c.bf16 %v1758_v50, %v1755_v25  ;;  %v1905_v48 = vld [vmem:[#allocation13 + $0x28] sm:$0xff]  ;;  %v1920_v25 = vld [vmem:[#allocation13 + $0xa0] sm:$0xff] }
 0x400   : > { %v5609_v28 = vpack.c.bf16 %v1933_v18, %v1930_v19  ;;  %v1942_v62 = vld [vmem:[#allocation13 + $0x150] sm:$0xff]  ;;  %v1945_v19 = vld [vmem:[#allocation13 + $0x168] sm:$0xff] }
 0x401   : > { %4096 = vmatpush1.bf16.msra.mxu1 %v5563_v35  ;;  %3492 = vmatmul.mubr.f32.vlgmr.msra.gmra.mrb[8].mxu0 %v5572_v22  ;;  %v1749_v18 = vld [vmem:[#allocation11 + $0x130] sm:$0xff]  ;;  %v5636_v11 = vpack.c.bf16 %v1945_v19, %v1942_v62  ;;  %v5650_v3 = vsel %vm1627_vm3, %v5572_v22, %v5414_v9  ;;  %v1908_v19 = vld [vmem:[#allocation13 + $0x40] sm:$0xff] }
 0x402   : > { %4067 = vmatpush3.bf16.msra.mxu0 %v5568_v23  ;;  %4098 = vmatprep.subr.bf16.mxu1 %v5570_v36  ;;  %v5640_v21 = vpack.c.bf16 %v1752_v58, %v1749_v18  ;;  %v1902_v39 = vld [vmem:[#allocation13 + $0x10] sm:$0xff]  ;;  %v1911_v18 = vld [vmem:[#allocation13 + $0x58] sm:$0xff]  ;;  %v1917_v58 = vld [vmem:[#allocation13 + $0x88] sm:$0xff] }
 0x403   : > { %4068 = vmatprep.subr.bf16.mxu0 %v4770_v4  ;;  %3541 = vmatprep.mubr.msk.f32.mxu0 %vm4771_vm0, %v5953_v7  ;;  %v5657_v62 = vpack.c.bf16 %v1905_v48, %v1902_v39  ;;  %v5663_v9 = vpack.c.bf16 %v1911_v18, %v1908_v19  ;;  %v1914_v22 = vld [vmem:[#allocation13 + $0x70] sm:$0xff]  ;;  %v1929_v39 = vld [vmem:[#allocation13 + $0xe8] sm:$0xff]  ;;  %v1932_v19 = vld [vmem:[#allocation13 + $0x100] sm:$0xff] }
 0x404   : > { %v5669_v42 = vpack.c.bf16 %v1917_v58, %v1914_v22  ;;  %v1926_v50 = vld [vmem:[#allocation13 + $0xd0] sm:$0xff]  ;;  %v1935_v18 = vld [vmem:[#allocation13 + $0x118] sm:$0xff] }
 0x405   : > { %4100 = vmatpush1.bf16.msra.mxu1 %v5576_v40  ;;  %v5677_v48 = vpack.c.bf16 %v1929_v39, %v1926_v50  ;;  %v5681_v22 = vpack.c.bf16 %v1935_v18, %v1932_v19  ;;  %v1938_v58 = vld [vmem:[#allocation13 + $0x130] sm:$0xff]  ;;  %v1944_v50 = vld [vmem:[#allocation13 + $0x160] sm:$0xff]  ;;  %v1947_v39 = vld [vmem:[#allocation13 + $0x178] sm:$0xff]  ;;  %v5979_v19 = vmov 0.0  }
 0x406   : > { %4070 = vmatpush3.bf16.msra.mxu0 %v5580_v49  ;;  %4102 = vmatprep.subr.bf16.mxu1 %v5582_v0  ;;  %v3006_v18 = vld [vmem:[%s5081_s28 + $0x18] sm:$0xff] }
 0x407   : > { %4071 = vmatprep.subr.bf16.mxu0 %v4770_v4 }
 0x409   : > { %4104 = vmatpush1.bf16.msra.mxu1 %v5588_v10 }
 0x40a   : > { %4073 = vmatpush3.bf16.msra.mxu0 %v5592_v24  ;;  %4106 = vmatprep.subr.bf16.mxu1 %v5594_v47 }
 0x40b   : > { %4074 = vmatprep.subr.bf16.mxu0 %v4770_v4 }
 0x40d   : > { %4108 = vmatpush1.bf16.msra.mxu1 %v5598_v33 }
 0x40e   : > { %4076 = vmatpush3.bf16.msra.mxu0 %v5602_v38  ;;  %4110 = vmatprep.subr.bf16.mxu1 %v5604_v54 }
 0x40f   : > { %4077 = vmatprep.subr.bf16.mxu0 %v4770_v4 }
 0x411   : > { %4112 = vmatpush1.bf16.msra.mxu1 %v5609_v28 }
 0x412   : > { %4079 = vmatpush3.bf16.msra.mxu0 %v5618_v2  ;;  %4114 = vmatprep.subr.bf16.mxu1 %v5620_v16 }
 0x413   : > { %4080 = vmatprep.subr.bf16.mxu0 %v4770_v4 }
 0x415   : > { %4116 = vmatpush1.bf16.msra.mxu1 %v5624_v6 }
 0x416   : > { %4082 = vmatpush3.bf16.msra.mxu0 %v5630_v26  ;;  %4118 = vmatprep.subr.bf16.mxu1 %v5632_v44 }
 0x417   : > { %4083 = vmatprep.subr.bf16.mxu0 %v4770_v4 }
 0x419   : > { %4120 = vmatpush1.bf16.msra.mxu1 %v5636_v11 }
 0x41a   : > { %4085 = vmatpush3.bf16.msra.mxu0 %v5640_v21  ;;  %4145 = vmatprep.subr.bf16.mxu1 %v4770_v4 }
 0x41b   : > { %4086 = vmatprep.subr.bf16.mxu0 %v4770_v4 }
 0x41c   : > { %2013 = vmatmul.mubr.f32.vlgmr.msra.gmra.mrb[12].mxu1 %v5650_v3 }
 0x41d   : > { %3611 = vmatprep.mubr.msk.f32.mxu1 %vm4771_vm0, %v5953_v7 }
 0x41e   : > { %4088 = vmatpush3.bf16.msra.mxu0 %v5645_v13 }
 0x41f   : > { %4121 = vmatprep.subr.bf16.mxu0 %v4770_v4 }
 0x421   : > { %3542 = vmatmul.mubr.f32.vlgmr.msra.gmra.mrb[10].mxu0 %v1710_v61  ;;  %v5673_v61 = vpack.c.bf16 %v1923_v32, %v1920_v25  ;;  %v1941_v25 = vld [vmem:[#allocation13 + $0x148] sm:$0xff] }
 0x422   : > { %4123 = vmatpush3.bf16.msra.mxu0 %v5657_v62  ;;  %3576 = vmatprep.mubr.msk.f32.mxu0 %vm4771_vm0, %v5953_v7  ;;  %v5685_v32 = vpack.c.bf16 %v1941_v25, %v1938_v58  ;;  %v5689_v7 = vpack.c.bf16 %v1947_v39, %v1944_v50  ;;  %v2128_v25 = vld [vmem:[#allocation14 + $0x70] sm:$0xff]  ;;  %v2129_v50 = vld [vmem:[#allocation14 + $0x78] sm:$0xff] }
 0x423   : > { %4124 = vmatprep.subr.bf16.mxu0 %v4770_v4  ;;  %v5750_v39 = vpack.c.bf16 %v2129_v50, %v2128_v25 }
 0x426   : > { %4126 = vmatpush3.bf16.msra.mxu0 %v5663_v9 }
 0x427   : > { %4127 = vmatprep.subr.bf16.mxu0 %v4770_v4 }
 0x42a   : > { %4129 = vmatpush3.bf16.msra.mxu0 %v5669_v42 }
 0x42b   : > { %4130 = vmatprep.subr.bf16.mxu0 %v4770_v4 }
 0x42e   : > { %4132 = vmatpush3.bf16.msra.mxu0 %v5673_v61 }
 0x42f   : > { %4133 = vmatprep.subr.bf16.mxu0 %v4770_v4 }
 0x432   : > { %4135 = vmatpush3.bf16.msra.mxu0 %v5677_v48 }
 0x433   : > { %4136 = vmatprep.subr.bf16.mxu0 %v4770_v4 }
 0x436   : > { %4138 = vmatpush3.bf16.msra.mxu0 %v5681_v22 }
 0x437   : > { %4139 = vmatprep.subr.bf16.mxu0 %v4770_v4 }
 0x43a   : > { %4141 = vmatpush3.bf16.msra.mxu0 %v5685_v32 }
 0x43b   : > { %4142 = vmatprep.subr.bf16.mxu0 %v4770_v4 }
 0x43e   : > { %4144 = vmatpush3.bf16.msra.mxu0 %v5689_v7 }
 0x43f   : > { %4169 = vmatprep.subr.bf16.mxu0 %v4770_v4 }
 0x441   : > { %3577 = vmatmul.mubr.f32.vlgmr.msra.gmra.mrb[12].mxu0 %v5650_v3 }
 0x442   : > { %4171 = vmatpush3.bf16.msra.mxu0 %v5472_v30  ;;  %3626 = vmatprep.mubr.msk.f32.mxu0 %vm4771_vm0, %v5979_v19  ;;  %v2114_v30 = vld [vmem:[#allocation14] sm:$0xff] }
 0x443   : > { %4172 = vmatprep.subr.bf16.mxu0 %v4770_v4 }
 0x446   : > { %4174 = vmatpush3.bf16.msra.mxu0 %v5477_v57  ;;  %v2115_v57 = vld [vmem:[#allocation14 + $0x8] sm:$0xff] }
 0x447   : > { %4175 = vmatprep.subr.bf16.mxu0 %v4770_v4 }
 0x44a   : > { %4177 = vmatpush3.bf16.msra.mxu0 %v5483_v52  ;;  %v2116_v52 = vld [vmem:[#allocation14 + $0x10] sm:$0xff] }
 0x44b   : > { %4179 = vmatprep.subr.bf16.mxu0 %v5490_v27  ;;  %v5722_v27 = vpack.c.bf16 %v2115_v57, %v2114_v30 }
 0x44d   : > { %3627 = vmatmul.mubr.msk.f32.vlgmr.msra.gmra.mrb[14].mxu0 %vm450_vm1, %v3006_v18  ;;  %4147 = vmatpush3.bf16.msra.mxu1 %v5722_v27 }
 0x44e   : > { %4181 = vmatpush1.bf16.msra.mxu0 %v5492_v59  ;;  %2409 = vmatprep.mubr.f32.mxu0 %v5979_v19  ;;  %v2117_v59 = vld [vmem:[#allocation14 + $0x18] sm:$0xff] }
 0x44f   : > { %4183 = vmatprep.subr.bf16.mxu0 %v5494_v63  ;;  %v5725_v63 = vpack.c.bf16 %v2117_v59, %v2116_v52  ;;  %4148 = vmatprep.subr.bf16.mxu1 %v4770_v4 }
 0x451   : > { %4150 = vmatpush3.bf16.msra.mxu1 %v5725_v63 }
 0x452   : > { %4185 = vmatpush1.bf16.msra.mxu0 %v5498_v31  ;;  %v2118_v31 = vld [vmem:[#allocation14 + $0x20] sm:$0xff]  ;;  %4151 = vmatprep.subr.bf16.mxu1 %v4770_v4 }
 0x453   : > { %4187 = vmatprep.subr.bf16.mxu0 %v5501_v46  ;;  %v2119_v46 = vld [vmem:[#allocation14 + $0x28] sm:$0xff] }
 0x456   : > { %4189 = vmatpush1.bf16.msra.mxu0 %v5504_v53  ;;  %v5729_v53 = vpack.c.bf16 %v2119_v46, %v2118_v31 }
 0x457   : > { %4191 = vmatprep.subr.bf16.mxu0 %v5507_v5  ;;  %v2120_v5 = vld [vmem:[#allocation14 + $0x30] sm:$0xff] }
 0x458   : > { %4153 = vmatpush3.bf16.msra.mxu1 %v5729_v53 }
 0x459   : > { %4154 = vmatprep.subr.bf16.mxu1 %v4770_v4 }
 0x45a   : > { %4193 = vmatpush1.bf16.msra.mxu0 %v5510_v37  ;;  %v2121_v37 = vld [vmem:[#allocation14 + $0x38] sm:$0xff] }
 0x45b   : > { %4195 = vmatprep.subr.bf16.mxu0 %v5514_v55  ;;  %v5734_v55 = vpack.c.bf16 %v2121_v37, %v2120_v5 }
 0x45d   : > { %4156 = vmatpush3.bf16.msra.mxu1 %v5734_v55 }
 0x45e   : > { %4197 = vmatpush1.bf16.msra.mxu0 %v5516_v12  ;;  %4157 = vmatprep.subr.bf16.mxu1 %v4770_v4  ;;  %v2122_v12 = vld [vmem:[#allocation14 + $0x40] sm:$0xff] }
 0x45f   : > { %4199 = vmatprep.subr.bf16.mxu0 %v5520_v34  ;;  %v2123_v34 = vld [vmem:[#allocation14 + $0x48] sm:$0xff] }
 0x462   : > { %4201 = vmatpush1.bf16.msra.mxu0 %v5522_v56  ;;  %v5738_v56 = vpack.c.bf16 %v2123_v34, %v2122_v12 }
 0x463   : > { %4203 = vmatprep.subr.bf16.mxu0 %v5526_v17  ;;  %v2124_v17 = vld [vmem:[#allocation14 + $0x50] sm:$0xff] }
 0x464   : > { %4159 = vmatpush3.bf16.msra.mxu1 %v5738_v56 }
 0x465   : > { %4160 = vmatprep.subr.bf16.mxu1 %v4770_v4 }
 0x466   : > { %4205 = vmatpush1.bf16.msra.mxu0 %v5528_v43  ;;  %v2125_v43 = vld [vmem:[#allocation14 + $0x58] sm:$0xff] }
 0x467   : > { %4207 = vmatprep.subr.bf16.mxu0 %v5532_v41  ;;  %v5742_v41 = vpack.c.bf16 %v2125_v43, %v2124_v17 }
 0x469   : > { %4162 = vmatpush3.bf16.msra.mxu1 %v5742_v41 }
 0x46a   : > { %4209 = vmatpush1.bf16.msra.mxu0 %v5534_v20  ;;  %4163 = vmatprep.subr.bf16.mxu1 %v4770_v4  ;;  %v2126_v20 = vld [vmem:[#allocation14 + $0x60] sm:$0xff] }
 0x46b   : > { %4235 = vmatprep.subr.bf16.mxu0 %v5538_v1  ;;  %v2127_v1 = vld [vmem:[#allocation14 + $0x68] sm:$0xff] }
 0x46c   : > { %v5746_v58 = vpack.c.bf16 %v2127_v1, %v2126_v20 }
 0x46e   : > { %4165 = vmatpush3.bf16.msra.mxu1 %v5746_v58 }
 0x46f   : > { %4166 = vmatprep.subr.bf16.mxu1 %v4770_v4 }
 0x472   : > { %4168 = vmatpush3.bf16.msra.mxu1 %v5750_v39 }
 0x473   : > { %4210 = vmatprep.subr.bf16.mxu1 %v4770_v4 }
 0x4d4   : > { %v1617_v18 = vpop.f32.mrb[8].mxu0 }
 0x4d5   : > { %v1618_v30 = vadd.f32 %v5544_v29, %v1617_v18  ;;  %v3493_v57 = vpop.f32.mrb[9].mxu0 }
 0x4d7   : > { %2999 = vst [vmem:[%s5099_s21 + $0x8] sm:$0xff] %v1618_v30 }
 0x4ef   : > { %v2014_v52 = vpop.f32.mrb[12].mxu1 }
 0x4f0   : > { %v2016_v59 = vpop.f32.mrb[13].mxu1  ;;  %v2090_v31 = vadd.f32 %v5361_v14, %v2014_v52 }
 0x4f1   : > { %v2098_v12 = vadd.f32 %v5367_v8, %v2016_v59  ;;  %v4475_v59 = vld [vmem:[%s5941_s6] ss:$0 sm:$0xff] }
 0x4f2   : > { %v3002_v37 = vmul.f32 -1.442695, %v2090_v31 }
 0x4f3   : > { %v3003_v34 = vmul.f32 -1.442695, %v2098_v12 }
 0x4f4   : > { %v1896_v46 = vpop.f32.mrb[10].mxu0  ;;  %4455 = vpow2.f32 %v3002_v37 }
 0x4f5   : > { %v3543_v5 = vpop.f32.mrb[11].mxu0  ;;  %4457 = vpow2.f32 %v3003_v34  ;;  %v2105_v14 = vadd.f32 %v5390_v51, %v1896_v46 }
 0x4fe   : > { %v4456_v17 = vpop.eup %4455 }
 0x4ff   : > { %v2094_v43 = vadd.f32 1.0, %v4456_v17  ;;  %v4458_v20 = vpop.eup %4457 }
 0x500   : > { %v2102_v1 = vadd.f32 1.0, %v4458_v20 }
 0x501   : > { %4459 = vrcp.f32 %v2094_v43 }
 0x502   : > { %4461 = vrcp.f32 %v2102_v1 }
 0x50b   : > { %v4460_v18 = vpop.eup %4459 }
 0x50c   : > { %v4462_v8 = vpop.eup %4461 }
 0x50d   : > { %v2110_v12 = vsub.f32 1.0, %v4462_v8  ;;  %v2112_v51 = vmul.f32 %v4462_v8, %v5650_v3 }
 0x514   : > { %v2085_v29 = vpop.f32.mrb[12].mxu0 }
 0x515   : > { %v2106_v25 = vadd.f32 %v5382_v45, %v2085_v29  ;;  %v3578_v50 = vpop.f32.mrb[13].mxu0 }
 0x517   : > { %v2107_v30 = vmul.f32 %v4460_v18, %v2106_v25 }
 0x519   : > { %v2108_v57 = vadd.f32 %v2107_v30, %v2105_v14 }
 0x51b   : > { %4463 = vtanh.f32 %v2108_v57 }
 0x520   : > { %v2292_v52 = vpop.f32.mrb[14].mxu0 }
 0x521   : > { %v2293_v31 = vadd.f32 %v4475_v59, %v2292_v52  ;;  %v3628_v5 = vpop.f32.mrb[15].mxu0 }
 0x523   : > { %v2296_v37 = vmax.f32 %v2293_v31, 0.0 }
 0x525   : > { %v4464_v34 = vpop.eup %4463  ;;  %2410 = vmatmul.mubr.f32.vlgmr.msra.gmra.mrb[16].mxu0 %v2296_v37 }
 0x526   : > { %4237 = vmatpush1.bf16.msra.mxu0 %v5555_v60  ;;  %v2111_v45 = vmul.f32 %v4464_v34, %v2110_v12  ;;  %2598 = vmatprep.mubr.f32.mxu0 %v5979_v19  ;;  %v2212_v60 = vstv %s2211_s13  ;;  %s2795_s13 = sadd.s32 3, %s5400_s11 }
 0x527   : > { %4239 = vmatprep.subr.bf16.mxu0 %v5558_v15  ;;  %vm2213_vm4 = vcmp.eq.s32.totalorder %v2212_v60, 1  ;;  %p2796_p3 = scmp.lt.s32.totalorder %s2795_s13, %s5393_s19 }
 0x528   : > { %v2113_v46 = vadd.f32 %v2112_v51, %v2111_v45 }
 0x529   : > { %s2797_s23 = scalar_select %p2796_p3, 1, 0 }
 0x52a   : > { %4241 = vmatpush1.bf16.msra.mxu0 %v5563_v35  ;;  %3612 = vmatmul.mubr.f32.vlgmr.msra.gmra.mrb[14].mxu1 %v2113_v46  ;;  %v5799_v15 = vsel %vm2213_vm4, %v2113_v46, %v5650_v3  ;;  %v3004_v35 = vld [vmem:[%s5943_s8] ss:$0 sm:$0xff]  ;;  %v4479_v3 = vld [vmem:[%s5941_s6 + $0x3] ss:$0 sm:$0xff] }
 0x52b   : > { %4212 = vmatpush3.bf16.msra.mxu1 %v5568_v23  ;;  %4243 = vmatprep.subr.bf16.mxu0 %v5570_v36 }
 0x52c   : > { %4213 = vmatprep.subr.bf16.mxu1 %v4770_v4  ;;  %3661 = vmatprep.mubr.msk.f32.mxu1 %vm4771_vm0, %v5979_v19 }
 0x52e   : > { %4245 = vmatpush1.bf16.msra.mxu0 %v5576_v40 }
 0x52f   : > { %4215 = vmatpush3.bf16.msra.mxu1 %v5580_v49  ;;  %4247 = vmatprep.subr.bf16.mxu0 %v5582_v0 }
 0x530   : > { %4216 = vmatprep.subr.bf16.mxu1 %v4770_v4 }
 0x532   : > { %4249 = vmatpush1.bf16.msra.mxu0 %v5588_v10  ;;  %v4476_v10 = vld [vmem:[%s5941_s6 + $0x1] ss:$0 sm:$0xff] }
 0x533   : > { %4218 = vmatpush3.bf16.msra.mxu1 %v5592_v24  ;;  %4251 = vmatprep.subr.bf16.mxu0 %v5594_v47 }
 0x534   : > { %4219 = vmatprep.subr.bf16.mxu1 %v4770_v4 }
 0x536   : > { %4253 = vmatpush1.bf16.msra.mxu0 %v5598_v33  ;;  %v4477_v33 = vld [vmem:[%s5941_s6 + $0x2] ss:$0 sm:$0xff] }
 0x537   : > { %4221 = vmatpush3.bf16.msra.mxu1 %v5602_v38  ;;  %4255 = vmatprep.subr.bf16.mxu0 %v5604_v54 }
 0x538   : > { %4222 = vmatprep.subr.bf16.mxu1 %v4770_v4 }
 0x53a   : > { %4257 = vmatpush1.bf16.msra.mxu0 %v5609_v28 }
 0x53b   : > { %4224 = vmatpush3.bf16.msra.mxu1 %v5618_v2  ;;  %4259 = vmatprep.subr.bf16.mxu0 %v5620_v16 }
 0x53c   : > { %4225 = vmatprep.subr.bf16.mxu1 %v4770_v4 }
 0x53e   : > { %4261 = vmatpush1.bf16.msra.mxu0 %v5624_v6 }
 0x53f   : > { %4227 = vmatpush3.bf16.msra.mxu1 %v5630_v26  ;;  %4263 = vmatprep.subr.bf16.mxu0 %v5632_v44  ;;  %v4478_v44 = vld [vmem:[%s5941_s6 + $0x4] ss:$0 sm:$0xff] }
 0x540   : > { %4228 = vmatprep.subr.bf16.mxu1 %v4770_v4 }
 0x542   : > { %4265 = vmatpush1.bf16.msra.mxu0 %v5636_v11 }
 0x543   : > { %4230 = vmatpush3.bf16.msra.mxu1 %v5640_v21  ;;  %4290 = vmatprep.subr.bf16.mxu0 %v4770_v4 }
 0x544   : > { %4231 = vmatprep.subr.bf16.mxu1 %v4770_v4 }
 0x545   : > { %2599 = vmatmul.mubr.f32.vlgmr.msra.gmra.mrb[16].mxu0 %v5799_v15 }
 0x546   : > { %4292 = vmatpush3.bf16.msra.mxu0 %v5722_v27  ;;  %3731 = vmatprep.mubr.msk.f32.mxu0 %vm4771_vm0, %v5979_v19 }
 0x547   : > { %4233 = vmatpush3.bf16.msra.mxu1 %v5645_v13  ;;  %4293 = vmatprep.subr.bf16.mxu0 %v4770_v4 }
 0x548   : > { %4266 = vmatprep.subr.bf16.mxu1 %v4770_v4 }
 0x54a   : > { %3662 = vmatmul.mubr.f32.vlgmr.msra.gmra.mrb[16].mxu1 %v2296_v37  ;;  %4295 = vmatpush3.bf16.msra.mxu0 %v5725_v63 }
 0x54b   : > { %4268 = vmatpush3.bf16.msra.mxu1 %v5657_v62  ;;  %3696 = vmatprep.mubr.msk.f32.mxu1 %vm4771_vm0, %v5979_v19 }
 0x54c   : > { %4269 = vmatprep.subr.bf16.mxu1 %v4770_v4  ;;  %4296 = vmatprep.subr.bf16.mxu0 %v4770_v4 }
 0x54e   : > { %4298 = vmatpush3.bf16.msra.mxu0 %v5729_v53 }
 0x54f   : > { %4271 = vmatpush3.bf16.msra.mxu1 %v5663_v9  ;;  %4299 = vmatprep.subr.bf16.mxu0 %v4770_v4 }
 0x550   : > { %4272 = vmatprep.subr.bf16.mxu1 %v4770_v4 }
 0x552   : > { %4301 = vmatpush3.bf16.msra.mxu0 %v5734_v55 }
 0x553   : > { %4274 = vmatpush3.bf16.msra.mxu1 %v5669_v42  ;;  %4302 = vmatprep.subr.bf16.mxu0 %v4770_v4 }
 0x554   : > { %4275 = vmatprep.subr.bf16.mxu1 %v4770_v4 }
 0x556   : > { %4304 = vmatpush3.bf16.msra.mxu0 %v5738_v56 }
 0x557   : > { %4277 = vmatpush3.bf16.msra.mxu1 %v5673_v61  ;;  %4305 = vmatprep.subr.bf16.mxu0 %v4770_v4 }
 0x558   : > { %4278 = vmatprep.subr.bf16.mxu1 %v4770_v4 }
 0x55a   : > { %4307 = vmatpush3.bf16.msra.mxu0 %v5742_v41 }
 0x55b   : > { %4280 = vmatpush3.bf16.msra.mxu1 %v5677_v48  ;;  %4308 = vmatprep.subr.bf16.mxu0 %v4770_v4 }
 0x55c   : > { %4281 = vmatprep.subr.bf16.mxu1 %v4770_v4 }
 0x55e   : > { %4310 = vmatpush3.bf16.msra.mxu0 %v5746_v58 }
 0x55f   : > { %4283 = vmatpush3.bf16.msra.mxu1 %v5681_v22  ;;  %4311 = vmatprep.subr.bf16.mxu0 %v4770_v4  ;;  %v2798_v22 = vstv %s2797_s23 }
 0x560   : > { %4284 = vmatprep.subr.bf16.mxu1 %v4770_v4  ;;  %vm2799_vm5 = vcmp.eq.s32.totalorder %v2798_v22, 1 }
 0x562   : > { %4313 = vmatpush3.bf16.msra.mxu0 %v5750_v39 }
 0x563   : > { %4286 = vmatpush3.bf16.msra.mxu1 %v5685_v32 }
 0x564   : > { %4287 = vmatprep.subr.bf16.mxu1 %v4770_v4 }
 0x567   : > { %4289 = vmatpush3.bf16.msra.mxu1 %v5689_v7 }
 0x56a   : > { %3697 = vmatmul.mubr.f32.vlgmr.msra.gmra.mrb[18].mxu1 %v5799_v15 }
 0x5fd   : > { %v2203_v23 = vpop.f32.mrb[14].mxu1 }
 0x5fe   : > { %v2204_v36 = vadd.f32 %v3004_v35, %v2203_v23  ;;  %v3613_v40 = vpop.f32.mrb[15].mxu1 }
 0x600   : > { %3005 = vst [vmem:[%s5099_s21 + $0x10] sm:$0xff] %v2204_v36 }
 0x618   : > { %v2600_v49 = vpop.f32.mrb[16].mxu0 }
 0x619   : > { %v2602_v0 = vpop.f32.mrb[17].mxu0  ;;  %v2676_v24 = vadd.f32 %v4476_v10, %v2600_v49 }
 0x61a   : > { %v2684_v38 = vadd.f32 %v4477_v33, %v2602_v0 }
 0x61b   : > { %v3008_v7 = vmul.f32 -1.442695, %v2676_v24 }
 0x61c   : > { %v3009_v54 = vmul.f32 -1.442695, %v2684_v38 }
 0x61d   : > { %v2482_v4 = vpop.f32.mrb[16].mxu1  ;;  %4465 = vpow2.f32 %v3008_v7 }
 0x61e   : > { %v3663_v47 = vpop.f32.mrb[17].mxu1  ;;  %4467 = vpow2.f32 %v3009_v54  ;;  %v2691_v62 = vadd.f32 %v4479_v3, %v2482_v4 }
 0x627   : > { %v4466_v28 = vpop.eup %4465 }
 0x628   : > { %v2680_v2 = vadd.f32 1.0, %v4466_v28  ;;  %v4468_v16 = vpop.eup %4467 }
 0x629   : > { %v2688_v6 = vadd.f32 1.0, %v4468_v16 }
 0x62a   : > { %4469 = vrcp.f32 %v2680_v2 }
 0x62b   : > { %4471 = vrcp.f32 %v2688_v6 }
 0x634   : > { %v4470_v13 = vpop.eup %4469 }
 0x635   : > { %v4472_v61 = vpop.eup %4471 }
 0x636   : > { %v2696_v48 = vsub.f32 1.0, %v4472_v61  ;;  %v2698_v27 = vmul.f32 %v4472_v61, %v5799_v15 }
 0x63d   : > { %v2671_v26 = vpop.f32.mrb[18].mxu1 }
 0x63e   : > { %v2692_v11 = vadd.f32 %v4478_v44, %v2671_v26  ;;  %v3698_v21 = vpop.f32.mrb[19].mxu1 }
 0x640   : > { %v2693_v9 = vmul.f32 %v4470_v13, %v2692_v11 }
 0x642   : > { %v2694_v42 = vadd.f32 %v2693_v9, %v2691_v62 }
 0x644   : > { %4473 = vtanh.f32 %v2694_v42 }
 0x64e   : > { %v4474_v32 = vpop.eup %4473 }
 0x64f   : > { %v2697_v19 = vmul.f32 %v4474_v32, %v2696_v48 }
 0x651   : > { %v2699_v63 = vadd.f32 %v2698_v27, %v2697_v19 }
 0x653   : > { %3732 = vmatmul.mubr.f32.vlgmr.msra.gmra.mrb[18].mxu0 %v2699_v63  ;;  %v2800_v53 = vsel %vm2799_vm5, %v2699_v63, %v5799_v15 }
 0x654   : > { %2801 = vst [vmem:[#allocation2] sm:$0xff] %v2800_v53  ;;  %2806 = vst [vmem:[#allocation17] sm:$0xff] (!%p3012_p4), %v2800_v53 }
 0x723   : > { %2805 = sbr.rel (%p3012_p4) target bundleno = 1834 (0x72a), region = 84 }
 0x726   : > { %v2789_v55 = vpop.f32.mrb[18].mxu0 }
 0x727   : > { %v2790_v56 = vadd.f32 %v3004_v35, %v2789_v55  ;;  %v3733_v41 = vpop.f32.mrb[19].mxu0 }
 0x729   : > { %3011 = vst [vmem:[%s5099_s21 + $0x18] sm:$0xff] %v2790_v56 }
 0x72a PF: > { %s3021_s19 = sshll.u32 %s4856_s20, 9  ;;  %s2821_s0 = sshll.u32 %s5099_s21, 4  ;;  %s5869_s0 = int_to_ptr.vmem [resolvable:$true] %s2821_s0 }
 0x72b   : > { %s5866_s27 = scalar_lea.hbm %s5944_s9, %s3021_s19  ;;  %s2808_s26 = scalar_lea.sflag [#allocation7], %s5077_s4 }
 0x72c   : > { %s4650_s2 = scalar_lea.vmem %s5869_s0, 512  ;;  %p5980_p1 = scmp.ne.s32.totalorder %s5967_s14, 0 }
 0x72d   : > { %p4651_p5 = scmp.ne.s32.totalorder %s5869_s0, %s4650_s2  ;;  %s4773_s24 = smov [#allocation16]  }
 0x72e   : > { %s4654_s28 = sshll.u32 %s4773_s24, 4  ;;  %s4655_s28 = int_to_ptr.vmem [resolvable:$false] %s4654_s28 }
 0x72f   : > { %p4652_p7 = pnand %p4651_p5, %p5980_p1  ;;  %s4656_s22 = scalar_lea.vmem %s4655_s28, 1024 }
 0x730   : > { %p4657_p2 = scmp.lt.s32.totalorder %s5869_s0, %s4655_s28  ;;  %p4658_p9 = scmp.lt.s32.totalorder %s4656_s22, %s4650_s2 }
 0x731   : > { %p4653_p0 = pneg %p4652_p7 }
 0x732   : > { %p4659_p10 = por %p4658_p9, %p4657_p2 }
 0x734   : > { %p4660_p12 = pnand %p4659_p10, %p4653_p0 }
 0x736   : > { %4663 = shalt.err (!%p4660_p12)
}
 0x737   : > { %s4664_s21 = scalar_lea.hbm %s5866_s27, 512  ;;  %s4668_s23 = scalar_lea.hbm %s5944_s9, 1024 }
 0x738   : > { %p4665_p11 = scmp.ne.s32.totalorder %s5866_s27, %s4664_s21  ;;  %p4669_p8 = scmp.lt.u32.totalorder %s5866_s27, %s5944_s9 }
 0x739   : > { %p4670_p3 = scmp.lt.u32.totalorder %s4668_s23, %s4664_s21  ;;  %p4672_p5 = scmp.lt.u32.totalorder %s4664_s21, %s5866_s27 }
 0x73a   : > { %p4666_p13 = pnand %p4665_p11, %p5980_p1 }
 0x73b   : > { %p4671_p4 = por %p4670_p3, %p4669_p8 }
 0x73c   : > { %p4667_p6 = pneg %p4666_p13 }
 0x73d   : > { %p4673_p7 = por %p4672_p5, %p4671_p4 }
 0x73f   : > { %p4674_p0 = pnand %p4673_p7, %p4667_p6 }
 0x741   : > { %4677 = shalt.err (!%p4674_p0)
}
 0x742   : > { %s4774_s25 = smov 128   ;;  %s4775_s2 = smov 8  }
 0x743   : > { %4344 = dma.vmem_to_hbm [thread:$0]  (%p5980_p1), %s5869_s0, 512, %s5866_s27, %s2808_s26, %s4774_s25, %s4774_s25, %s4775_s2  }
 0x744   : > { %s4776_s24 = smov [#allocation17]   ;;  %p5981_p9 = scmp.eq.s32.totalorder %s4856_s20, 1 }
 0x745   : > { %s2835_s28 = sshll.u32 %s4776_s24, 4  ;;  %s2836_s28 = int_to_ptr.vmem [resolvable:$true] %s2835_s28 }
 0x746   : > { %s4678_s22 = scalar_lea.vmem %s2836_s28, 128  ;;  %p4685_p11 = scmp.lt.s32.totalorder %s2836_s28, %s2836_s28 }
 0x747   : > { %p4679_p2 = scmp.ne.s32.totalorder %s2836_s28, %s4678_s22  ;;  %p4686_p13 = scmp.lt.s32.totalorder %s4678_s22, %s4678_s22 }
 0x749   : > { %p4680_p10 = pnand %p4679_p2, %p5981_p9  ;;  %p4687_p6 = por %p4686_p13, %p4685_p11 }
 0x74b   : > { %p4681_p12 = pneg %p4680_p10 }
 0x74d   : > { %p4688_p8 = pnand %p4687_p6, %p4681_p12 }
 0x74f   : > { %4691 = shalt.err (!%p4688_p8)
}
 0x750   : > { %s5982_s13 = sld [smem:[#allocation27_spill]]  ;;  %p5983_p3 = pmov %p5981_p9 }
 0x756   : > { %s4692_s14 = scalar_lea.hbm %s5982_s13, 128 }
 0x757   : > { %p4693_p1 = scmp.ne.s32.totalorder %s5982_s13, %s4692_s14  ;;  %p4698_p7 = scmp.lt.u32.totalorder %s4692_s14, %s5982_s13 }
 0x759   : > { %p4694_p4 = pnand %p4693_p1, %p5983_p3 }
 0x75b   : > { %p4695_p5 = pneg %p4694_p4 }
 0x75d   : > { %p4700_p0 = pnand %p4698_p7, %p4695_p5 }
 0x75f   : > { %4703 = shalt.err (!%p4700_p0)
}
 0x760   : > { %p5984_p2 = pmov %p5983_p3 }
 0x762   : > { %4346 = dma.vmem_to_hbm [thread:$0]  (%p5984_p2), %s2836_s28, 128, %s5982_s13, [#allocation18]  }
 0x763   : > { %p5985_p9 = pmov %p5984_p2 }
 0x764   : > { %p5986_p10 = pmov %p5984_p2 }
 0x765   : > { %4737 = dma.done.wait (%p5985_p9), [#allocation18], 128  }
 0x766   : > { %4739 = vsyncadd (%p5986_p10), [#allocation18], 4294967168 }
 0x767 PF: > { %s2851_s11 = sand.u32 1, %s4746_s15   ;;  %p5987_p12 = scmp.ne.s32.totalorder %s5968_s29, 0 }
 0x768   : > { %p5988_p11 = scmp.ge.s32.totalorder %s4758_s18, 2  ;;  %s2852_s25 = scalar_lea.sflag [#allocation7], %s2851_s11 }
 0x76a   : > { %p4371_p13 = pnand %p5988_p11, %p5987_p12 }
 0x76c   : > { %4741 = dma.done.wait (!%p4371_p13), %s2852_s25, 512  }
 0x76d   : > { %4743 = vsyncadd (!%p4371_p13), %s2852_s25, 4294966784  ;;  %p29_p6 = scmp.ge.s32.totalorder %s4999_s12, 4   ;;  %s5989_s15 = smov %s4750_s16 }
 0x76e   : > { %s5990_s16 = smov %s4754_s17  ;;  %s5991_s17 = smov %s5011_s10 }
 0x76f   : > { %s5992_s18 = smov %s4999_s12  ;;  %31 = sbr.rel (!%p29_p6) target bundleno = 14 (0xe), region = 139 }
 0x776   :  { %2857 = vsyncpa [#allocation6], 1 }
 0x777   :  { %2859 = vsyncpa [#allocation6 + $0x1], 1 }
 0x778   :  { %2860 = vsyncpa [#allocation9], 1 }
 0x779   :  { %2861 = vsyncpa [#allocation12], 1 }
 0x77a   :  { %2862 = vsyncpa [#allocation15], 1 }
 0x77b   :  { %2863 = vsyncpa [#allocation7], 1 }
 0x77c   :  { %2865 = vsyncpa [#allocation7 + $0x1], 1 }
 0x77d   :  { %2866 = vsyncpa [#allocation18], 1 }

</bundles_post_ra>
